<compile_context>
chip_gen: v7x
topology: tpu7x:2x2x1
jax: 0.10.0
libtpu: 0.0.40
codegen_flags: <defaults>
</compile_context>

<pallas_src>
import jax
import jax.numpy as jnp
from jax.experimental import pallas as pl
from jax.experimental.pallas import tpu as pltpu

MATMUL_DTYPE = jnp.bfloat16   # MXU input dtype (f32 accumulation everywhere)


# ----------------------------- helpers --------------------------------------

def _round_up(x, m):
    return (x + m - 1) // m * m


def _pick_row_tile(m, target):
    """(padded_rows, tile_rows): padded_rows % tile_rows == 0, tile_rows % 8 == 0."""
    m8 = _round_up(m, 8)
    if m8 <= target:
        return m8, m8
    return _round_up(m, target), target


# ------------------- fused conv + bias + ReLU + 2x2 maxpool -----------------
# patches: (4, M, K)   quadrant-major im2col (quadrant = position inside 2x2 pool window)
# grid  : (M/TM, 4)    quadrant axis is an "arbitrary" reduction -> output block resident;
#                      pooling == running max of relu(patch @ w + b) over the 4 quadrants.

def _conv_pool_kernel(p_ref, w_ref, b_ref, o_ref):
    q = pl.program_id(1)
    acc = jnp.dot(p_ref[0], w_ref[...], preferred_element_type=jnp.float32)
    y = jnp.maximum(acc + b_ref[...], 0.0)

    @pl.when(q == 0)
    def _():
        o_ref[...] = y

    @pl.when(q > 0)
    def _():
        o_ref[...] = jnp.maximum(o_ref[...], y)


def conv_relu_pool(x_nhwc, w_mat, b, kh=3, kw=3, row_tile=512):
    """x: (N,H,W,C) NHWC. w_mat: (C*kh*kw, OC) with K ordered (c, kh, kw) like PyTorch.
    Returns pooled activation (N, PH, PW, OC), PH = (H-kh+1)//2, PW = (W-kw+1)//2."""
    N, H, W, C = x_nhwc.shape
    OH, OW = H - kh + 1, W - kw + 1
    PH, PW = OH // 2, OW // 2
    K = C * kh * kw
    OC = w_mat.shape[1]

    # --- quadrant-major im2col (XLA glue: pure data re-ordering, done once per stage) ---
    cols = [x_nhwc[:, i:i + OH, j:j + OW, :] for i in range(kh) for j in range(kw)]
    p = jnp.stack(cols, axis=-1)                    # (N, OH, OW, C, kh*kw) -> K = c*kh*kw + ij
    p = p[:, :2 * PH, :2 * PW]                      # floor-mode pooling crop
    p = p.reshape(N, PH, 2, PW, 2, K)               # split pool windows
    p = p.transpose(2, 4, 0, 1, 3, 5)               # (dh, dw, N, PH, PW, K)
    p = p.reshape(4, N * PH * PW, K)                # quadrant-major

    M = N * PH * PW
    Mp, TM = _pick_row_tile(M, row_tile)
    p = jnp.pad(p, ((0, 0), (0, Mp - M), (0, 0))).astype(MATMUL_DTYPE)

    out = pl.pallas_call(
        _conv_pool_kernel,
        out_shape=jax.ShapeDtypeStruct((Mp, OC), jnp.float32),
        grid=(Mp // TM, 4),
        in_specs=[
            pl.BlockSpec((1, TM, K), lambda i, q: (q, i, 0)),
            pl.BlockSpec((K, OC), lambda i, q: (0, 0)),
            pl.BlockSpec((1, OC), lambda i, q: (0, 0)),
        ],
        out_specs=pl.BlockSpec((TM, OC), lambda i, q: (i, 0)),
        compiler_params=pltpu.CompilerParams(
            dimension_semantics=("parallel", "arbitrary")),
    )(p, w_mat, b)

    return out[:M].reshape(N, PH, PW, OC)


# ------------------------- fused fc1 -> fc2 -> fc3 ---------------------------

def _fc_head_kernel(x_ref, w1_ref, b1_ref, w2_ref, b2_ref, w3_ref, b3_ref, o_ref):
    h = jnp.dot(x_ref[...], w1_ref[...], preferred_element_type=jnp.float32)
    h = jnp.maximum(h + b1_ref[...], 0.0).astype(w2_ref.dtype)
    h = jnp.dot(h, w2_ref[...], preferred_element_type=jnp.float32)
    h = jnp.maximum(h + b2_ref[...], 0.0).astype(w3_ref.dtype)
    o = jnp.dot(h, w3_ref[...], preferred_element_type=jnp.float32)
    o_ref[...] = o + b3_ref[...]


def fc_head(feats, w1, b1, w2, b2, w3, b3, row_tile=256):
    """feats: (N, D). All three linear layers in one kernel; weights VMEM-resident."""
    N, D = feats.shape
    Np, TB = _pick_row_tile(N, row_tile)
    x = jnp.pad(feats, ((0, Np - N), (0, 0))).astype(MATMUL_DTYPE)
    n_out = w3.shape[1]

    out = pl.pallas_call(
        _fc_head_kernel,
        out_shape=jax.ShapeDtypeStruct((Np, n_out), jnp.float32),
        grid=(Np // TB,),
        in_specs=[
            pl.BlockSpec((TB, D), lambda i: (i, 0)),
            pl.BlockSpec(w1.shape, lambda i: (0, 0)),
            pl.BlockSpec(b1.shape, lambda i: (0, 0)),
            pl.BlockSpec(w2.shape, lambda i: (0, 0)),
            pl.BlockSpec(b2.shape, lambda i: (0, 0)),
            pl.BlockSpec(w3.shape, lambda i: (0, 0)),
            pl.BlockSpec(b3.shape, lambda i: (0, 0)),
        ],
        out_specs=pl.BlockSpec((TB, n_out), lambda i: (i, 0)),
        compiler_params=pltpu.CompilerParams(
            dimension_semantics=("parallel",)),
    )(x, w1, b1, w2, b2, w3, b3)

    return out[:N]


# ------------------------------ the model ------------------------------------

def init_params(key):
    """PyTorch-layout parameters (same shapes/semantics as the nn.Module)."""
    ks = jax.random.split(key, 10)
    s = 0.1
    return {
        "conv1_w": jax.random.normal(ks[0], (12, 3, 3, 3), jnp.float32) * s,
        "conv1_b": jax.random.normal(ks[1], (12,), jnp.float32) * s,
        "conv2_w": jax.random.normal(ks[2], (32, 12, 3, 3), jnp.float32) * s,
        "conv2_b": jax.random.normal(ks[3], (32,), jnp.float32) * s,
        "fc1_w": jax.random.normal(ks[4], (120, 32 * 6 * 6), jnp.float32) * s,
        "fc1_b": jax.random.normal(ks[5], (120,), jnp.float32) * s,
        "fc2_w": jax.random.normal(ks[6], (84, 120), jnp.float32) * s,
        "fc2_b": jax.random.normal(ks[7], (84,), jnp.float32) * s,
        "fc3_w": jax.random.normal(ks[8], (10, 84), jnp.float32) * s,
        "fc3_b": jax.random.normal(ks[9], (10,), jnp.float32) * s,
    }


def prepare_params(p):
    """One-time TPU-friendly repack: conv weights -> (K, OC) matmul matrices,
    FC weights pre-transposed, fc1 columns permuted from PyTorch's NCHW flatten
    (c*36 + s) to our channels-last flatten (s*32 + c). Matmul operands in bf16."""
    def conv_mat(w):                                      # (OC, IC, KH, KW) -> (K, OC)
        return w.reshape(w.shape[0], -1).T.astype(MATMUL_DTYPE)

    fc1_perm = (p["fc1_w"].reshape(120, 32, 36)
                .transpose(0, 2, 1).reshape(120, 32 * 36))  # columns now s*32 + c

    def bias(b):
        return b.reshape(1, -1).astype(jnp.float32)

    return {
        "c1_w": conv_mat(p["conv1_w"]), "c1_b": bias(p["conv1_b"]),
        "c2_w": conv_mat(p["conv2_w"]), "c2_b": bias(p["conv2_b"]),
        "fc1_w": fc1_perm.T.astype(MATMUL_DTYPE), "fc1_b": bias(p["fc1_b"]),
        "fc2_w": p["fc2_w"].T.astype(MATMUL_DTYPE), "fc2_b": bias(p["fc2_b"]),
        "fc3_w": p["fc3_w"].T.astype(MATMUL_DTYPE), "fc3_b": bias(p["fc3_b"]),
    }


def convnet_forward(tp, x_nchw):
    # x: (N, 3, 32, 32)  (32x32 forced by fc1 expecting 32*6*6 features)
    x = x_nchw.transpose(0, 2, 3, 1)                       # NHWC, once, at the boundary
    x = conv_relu_pool(x, tp["c1_w"], tp["c1_b"])          # (N, 15, 15, 12)
    x = conv_relu_pool(x, tp["c2_w"], tp["c2_b"])          # (N, 6, 6, 32)
    feats = x.reshape(x.shape[0], -1)                      # (N, 1152) channels-last flatten
    return fc_head(feats, tp["fc1_w"], tp["fc1_b"],        # fc1+relu+fc2+relu+fc3 fused
                   tp["fc2_w"], tp["fc2_b"],
                   tp["fc3_w"], tp["fc3_b"])               # (N, 10)


if __name__ == "__main__":
    key = jax.random.PRNGKey(0)
    k_x, k_p = jax.random.split(key)
    x = jax.random.normal(k_x, (2, 3, 32, 32), jnp.float32)

    params = prepare_params(init_params(k_p))              # one-time weight repack
    fwd = jax.jit(convnet_forward)

    out = jax.block_until_ready(fwd(params, x))
    assert out.shape == (2, 10), out.shape
    print("KERNEL_OK")
</pallas_src>

<mosaic_0001>
module attributes {stable_mosaic.version = 11 : i64} {
  func.func @_conv_pool_kernel(%arg0: i32, %arg1: i32, %arg2: memref<1x456x27xbf16, #tpu.memory_space<vmem>>, %arg3: memref<27x12xbf16, #tpu.memory_space<vmem>>, %arg4: memref<1x12xf32, #tpu.memory_space<vmem>>, %arg5: memref<456x12xf32, #tpu.memory_space<vmem>>) attributes {dimension_semantics = [#tpu.dimension_semantics<parallel>, #tpu.dimension_semantics<arbitrary>], iteration_bounds = array<i64: 1, 4>, scalar_prefetch = 0 : i64, scratch_operands = 0 : i64, tpu.core_type = #tpu.core_type<tc>, window_params = [{transform_indices = @transform_0, window_bounds = array<i64: 1, 456, 27>}, {pipeline_mode = #tpu.pipeline_mode<synchronous>, transform_indices = @transform_1, window_bounds = array<i64: 27, 12>}, {pipeline_mode = #tpu.pipeline_mode<synchronous>, transform_indices = @transform_2, window_bounds = array<i64: 1, 12>}, {transform_indices = @transform_3, window_bounds = array<i64: 456, 12>}]} {
    %c0 = arith.constant 0 : index
    %c0_0 = arith.constant 0 : index
    %c0_1 = arith.constant 0 : index
    %0 = vector.load %arg2[%c0, %c0_0, %c0_1] : memref<1x456x27xbf16, #tpu.memory_space<vmem>>, vector<1x456x27xbf16>
    %1 = vector.shape_cast %0 : vector<1x456x27xbf16> to vector<456x27xbf16>
    %c0_2 = arith.constant 0 : index
    %c0_3 = arith.constant 0 : index
    %2 = vector.load %arg3[%c0_2, %c0_3] : memref<27x12xbf16, #tpu.memory_space<vmem>>, vector<27x12xbf16>
    %cst = arith.constant dense<0.000000e+00> : vector<456x12xf32>
    %3 = tpu.matmul %1, %2, %cst {dimension_numbers = #tpu.dot_dimension_numbers<[1], [0], [0], [1], [0, 0, 1, 1], [], []>} : vector<456x27xbf16>, vector<27x12xbf16>, vector<456x12xf32> -> vector<456x12xf32>
    %c0_4 = arith.constant 0 : index
    %c0_5 = arith.constant 0 : index
    %4 = vector.load %arg4[%c0_4, %c0_5] : memref<1x12xf32, #tpu.memory_space<vmem>>, vector<1x12xf32>
    %5 = vector.broadcast %4 : vector<1x12xf32> to vector<456x12xf32>
    %6 = arith.addf %3, %5 : vector<456x12xf32>
    %cst_6 = arith.constant 0.000000e+00 : f32
    %7 = vector.broadcast %cst_6 : f32 to vector<456x12xf32>
    %8 = arith.maximumf %6, %7 : vector<456x12xf32>
    %c0_i32 = arith.constant 0 : i32
    %9 = arith.cmpi eq, %arg1, %c0_i32 : i32
    %10 = arith.extui %9 : i1 to i32
    %c0_i32_7 = arith.constant 0 : i32
    %11 = arith.cmpi ne, %10, %c0_i32_7 : i32
    scf.if %11 {
      %c0_10 = arith.constant 0 : index
      %c0_11 = arith.constant 0 : index
      %15 = vector.load %arg5[%c0_10, %c0_11] : memref<456x12xf32, #tpu.memory_space<vmem>>, vector<456x12xf32>
      tpu.vector_store %arg5[%c0_10, %c0_11], %8 {strides = array<i32>} : memref<456x12xf32, #tpu.memory_space<vmem>>, vector<456x12xf32>,
    } else {
    }
    %c0_i32_8 = arith.constant 0 : i32
    %12 = arith.cmpi sgt, %arg1, %c0_i32_8 : i32
    %13 = arith.extui %12 : i1 to i32
    %c0_i32_9 = arith.constant 0 : i32
    %14 = arith.cmpi ne, %13, %c0_i32_9 : i32
    scf.if %14 {
      %c0_10 = arith.constant 0 : index
      %c0_11 = arith.constant 0 : index
      %15 = vector.load %arg5[%c0_10, %c0_11] : memref<456x12xf32, #tpu.memory_space<vmem>>, vector<456x12xf32>
      %16 = arith.maximumf %15, %8 : vector<456x12xf32>
      %c0_12 = arith.constant 0 : index
      %c0_13 = arith.constant 0 : index
      %17 = vector.load %arg5[%c0_12, %c0_13] : memref<456x12xf32, #tpu.memory_space<vmem>>, vector<456x12xf32>
      tpu.vector_store %arg5[%c0_12, %c0_13], %16 {strides = array<i32>} : memref<456x12xf32, #tpu.memory_space<vmem>>, vector<456x12xf32>,
    } else {
    }
    return
  }
  func.func @transform_0(%arg0: i32, %arg1: i32) -> (i32, i32, i32) {
    %c0_i32 = arith.constant 0 : i32
    %c0_i32_0 = arith.constant 0 : i32
    return %arg1, %arg0, %c0_i32 : i32, i32, i32
  }
  func.func @transform_1(%arg0: i32, %arg1: i32) -> (i32, i32) {
    %c0_i32 = arith.constant 0 : i32
    %c0_i32_0 = arith.constant 0 : i32
    %c0_i32_1 = arith.constant 0 : i32
    return %c0_i32, %c0_i32_0 : i32, i32
  }
  func.func @transform_2(%arg0: i32, %arg1: i32) -> (i32, i32) {
    %c0_i32 = arith.constant 0 : i32
    %c0_i32_0 = arith.constant 0 : i32
    %c0_i32_1 = arith.constant 0 : i32
    return %c0_i32, %c0_i32_0 : i32, i32
  }
  func.func @transform_3(%arg0: i32, %arg1: i32) -> (i32, i32) {
    %c0_i32 = arith.constant 0 : i32
    %c0_i32_0 = arith.constant 0 : i32
    return %arg0, %c0_i32 : i32, i32
  }
}

module attributes {stable_mosaic.version = 11 : i64} {
  func.func @_conv_pool_kernel(%arg0: i32, %arg1: i32, %arg2: memref<1x72x108xbf16, #tpu.memory_space<vmem>>, %arg3: memref<108x32xbf16, #tpu.memory_space<vmem>>, %arg4: memref<1x32xf32, #tpu.memory_space<vmem>>, %arg5: memref<72x32xf32, #tpu.memory_space<vmem>>) attributes {dimension_semantics = [#tpu.dimension_semantics<parallel>, #tpu.dimension_semantics<arbitrary>], iteration_bounds = array<i64: 1, 4>, scalar_prefetch = 0 : i64, scratch_operands = 0 : i64, tpu.core_type = #tpu.core_type<tc>, window_params = [{transform_indices = @transform_0, window_bounds = array<i64: 1, 72, 108>}, {pipeline_mode = #tpu.pipeline_mode<synchronous>, transform_indices = @transform_1, window_bounds = array<i64: 108, 32>}, {pipeline_mode = #tpu.pipeline_mode<synchronous>, transform_indices = @transform_2, window_bounds = array<i64: 1, 32>}, {transform_indices = @transform_3, window_bounds = array<i64: 72, 32>}]} {
    %c0 = arith.constant 0 : index
    %c0_0 = arith.constant 0 : index
    %c0_1 = arith.constant 0 : index
    %0 = vector.load %arg2[%c0, %c0_0, %c0_1] : memref<1x72x108xbf16, #tpu.memory_space<vmem>>, vector<1x72x108xbf16>
    %1 = vector.shape_cast %0 : vector<1x72x108xbf16> to vector<72x108xbf16>
    %c0_2 = arith.constant 0 : index
    %c0_3 = arith.constant 0 : index
    %2 = vector.load %arg3[%c0_2, %c0_3] : memref<108x32xbf16, #tpu.memory_space<vmem>>, vector<108x32xbf16>
    %cst = arith.constant dense<0.000000e+00> : vector<72x32xf32>
    %3 = tpu.matmul %1, %2, %cst {dimension_numbers = #tpu.dot_dimension_numbers<[1], [0], [0], [1], [0, 0, 1, 1], [], []>} : vector<72x108xbf16>, vector<108x32xbf16>, vector<72x32xf32> -> vector<72x32xf32>
    %c0_4 = arith.constant 0 : index
    %c0_5 = arith.constant 0 : index
    %4 = vector.load %arg4[%c0_4, %c0_5] : memref<1x32xf32, #tpu.memory_space<vmem>>, vector<1x32xf32>
    %5 = vector.broadcast %4 : vector<1x32xf32> to vector<72x32xf32>
    %6 = arith.addf %3, %5 : vector<72x32xf32>
    %cst_6 = arith.constant 0.000000e+00 : f32
    %7 = vector.broadcast %cst_6 : f32 to vector<72x32xf32>
    %8 = arith.maximumf %6, %7 : vector<72x32xf32>
    %c0_i32 = arith.constant 0 : i32
    %9 = arith.cmpi eq, %arg1, %c0_i32 : i32
    %10 = arith.extui %9 : i1 to i32
    %c0_i32_7 = arith.constant 0 : i32
    %11 = arith.cmpi ne, %10, %c0_i32_7 : i32
    scf.if %11 {
      %c0_10 = arith.constant 0 : index
      %c0_11 = arith.constant 0 : index
      %15 = vector.load %arg5[%c0_10, %c0_11] : memref<72x32xf32, #tpu.memory_space<vmem>>, vector<72x32xf32>
      tpu.vector_store %arg5[%c0_10, %c0_11], %8 {strides = array<i32>} : memref<72x32xf32, #tpu.memory_space<vmem>>, vector<72x32xf32>,
    } else {
    }
    %c0_i32_8 = arith.constant 0 : i32
    %12 = arith.cmpi sgt, %arg1, %c0_i32_8 : i32
    %13 = arith.extui %12 : i1 to i32
    %c0_i32_9 = arith.constant 0 : i32
    %14 = arith.cmpi ne, %13, %c0_i32_9 : i32
    scf.if %14 {
      %c0_10 = arith.constant 0 : index
      %c0_11 = arith.constant 0 : index
      %15 = vector.load %arg5[%c0_10, %c0_11] : memref<72x32xf32, #tpu.memory_space<vmem>>, vector<72x32xf32>
      %16 = arith.maximumf %15, %8 : vector<72x32xf32>
      %c0_12 = arith.constant 0 : index
      %c0_13 = arith.constant 0 : index
      %17 = vector.load %arg5[%c0_12, %c0_13] : memref<72x32xf32, #tpu.memory_space<vmem>>, vector<72x32xf32>
      tpu.vector_store %arg5[%c0_12, %c0_13], %16 {strides = array<i32>} : memref<72x32xf32, #tpu.memory_space<vmem>>, vector<72x32xf32>,
    } else {
    }
    return
  }
  func.func @transform_0(%arg0: i32, %arg1: i32) -> (i32, i32, i32) {
    %c0_i32 = arith.constant 0 : i32
    %c0_i32_0 = arith.constant 0 : i32
    return %arg1, %arg0, %c0_i32 : i32, i32, i32
  }
  func.func @transform_1(%arg0: i32, %arg1: i32) -> (i32, i32) {
    %c0_i32 = arith.constant 0 : i32
    %c0_i32_0 = arith.constant 0 : i32
    %c0_i32_1 = arith.constant 0 : i32
    return %c0_i32, %c0_i32_0 : i32, i32
  }
  func.func @transform_2(%arg0: i32, %arg1: i32) -> (i32, i32) {
    %c0_i32 = arith.constant 0 : i32
    %c0_i32_0 = arith.constant 0 : i32
    %c0_i32_1 = arith.constant 0 : i32
    return %c0_i32, %c0_i32_0 : i32, i32
  }
  func.func @transform_3(%arg0: i32, %arg1: i32) -> (i32, i32) {
    %c0_i32 = arith.constant 0 : i32
    %c0_i32_0 = arith.constant 0 : i32
    return %arg0, %c0_i32 : i32, i32
  }
}

module attributes {stable_mosaic.version = 11 : i64} {
  func.func @_fc_head_kernel(%arg0: i32, %arg1: memref<8x1152xbf16, #tpu.memory_space<vmem>>, %arg2: memref<1152x120xbf16, #tpu.memory_space<vmem>>, %arg3: memref<1x120xf32, #tpu.memory_space<vmem>>, %arg4: memref<120x84xbf16, #tpu.memory_space<vmem>>, %arg5: memref<1x84xf32, #tpu.memory_space<vmem>>, %arg6: memref<84x10xbf16, #tpu.memory_space<vmem>>, %arg7: memref<1x10xf32, #tpu.memory_space<vmem>>, %arg8: memref<8x10xf32, #tpu.memory_space<vmem>>) attributes {dimension_semantics = [#tpu.dimension_semantics<parallel>], iteration_bounds = array<i64: 1>, scalar_prefetch = 0 : i64, scratch_operands = 0 : i64, tpu.core_type = #tpu.core_type<tc>, window_params = [{transform_indices = @transform_0, window_bounds = array<i64: 8, 1152>}, {pipeline_mode = #tpu.pipeline_mode<synchronous>, transform_indices = @transform_1, window_bounds = array<i64: 1152, 120>}, {pipeline_mode = #tpu.pipeline_mode<synchronous>, transform_indices = @transform_2, window_bounds = array<i64: 1, 120>}, {pipeline_mode = #tpu.pipeline_mode<synchronous>, transform_indices = @transform_3, window_bounds = array<i64: 120, 84>}, {pipeline_mode = #tpu.pipeline_mode<synchronous>, transform_indices = @transform_4, window_bounds = array<i64: 1, 84>}, {pipeline_mode = #tpu.pipeline_mode<synchronous>, transform_indices = @transform_5, window_bounds = array<i64: 84, 10>}, {pipeline_mode = #tpu.pipeline_mode<synchronous>, transform_indices = @transform_6, window_bounds = array<i64: 1, 10>}, {transform_indices = @transform_7, window_bounds = array<i64: 8, 10>}]} {
    %c0 = arith.constant 0 : index
    %c0_0 = arith.constant 0 : index
    %0 = vector.load %arg1[%c0, %c0_0] : memref<8x1152xbf16, #tpu.memory_space<vmem>>, vector<8x1152xbf16>
    %c0_1 = arith.constant 0 : index
    %c0_2 = arith.constant 0 : index
    %1 = vector.load %arg2[%c0_1, %c0_2] : memref<1152x120xbf16, #tpu.memory_space<vmem>>, vector<1152x120xbf16>
    %cst = arith.constant dense<0.000000e+00> : vector<8x120xf32>
    %2 = tpu.matmul %0, %1, %cst {dimension_numbers = #tpu.dot_dimension_numbers<[1], [0], [0], [1], [0, 0, 1, 1], [], []>} : vector<8x1152xbf16>, vector<1152x120xbf16>, vector<8x120xf32> -> vector<8x120xf32>
    %c0_3 = arith.constant 0 : index
    %c0_4 = arith.constant 0 : index
    %3 = vector.load %arg3[%c0_3, %c0_4] : memref<1x120xf32, #tpu.memory_space<vmem>>, vector<1x120xf32>
    %4 = vector.broadcast %3 : vector<1x120xf32> to vector<8x120xf32>
    %5 = arith.addf %2, %4 : vector<8x120xf32>
    %cst_5 = arith.constant 0.000000e+00 : f32
    %6 = vector.broadcast %cst_5 : f32 to vector<8x120xf32>
    %7 = arith.maximumf %5, %6 : vector<8x120xf32>
    %8 = arith.truncf %7 : vector<8x120xf32> to vector<8x120xbf16>
    %c0_6 = arith.constant 0 : index
    %c0_7 = arith.constant 0 : index
    %9 = vector.load %arg4[%c0_6, %c0_7] : memref<120x84xbf16, #tpu.memory_space<vmem>>, vector<120x84xbf16>
    %cst_8 = arith.constant dense<0.000000e+00> : vector<8x84xf32>
    %10 = tpu.matmul %8, %9, %cst_8 {dimension_numbers = #tpu.dot_dimension_numbers<[1], [0], [0], [1], [0, 0, 1, 1], [], []>} : vector<8x120xbf16>, vector<120x84xbf16>, vector<8x84xf32> -> vector<8x84xf32>
    %c0_9 = arith.constant 0 : index
    %c0_10 = arith.constant 0 : index
    %11 = vector.load %arg5[%c0_9, %c0_10] : memref<1x84xf32, #tpu.memory_space<vmem>>, vector<1x84xf32>
    %12 = vector.broadcast %11 : vector<1x84xf32> to vector<8x84xf32>
    %13 = arith.addf %10, %12 : vector<8x84xf32>
    %cst_11 = arith.constant 0.000000e+00 : f32
    %14 = vector.broadcast %cst_11 : f32 to vector<8x84xf32>
    %15 = arith.maximumf %13, %14 : vector<8x84xf32>
    %16 = arith.truncf %15 : vector<8x84xf32> to vector<8x84xbf16>
    %c0_12 = arith.constant 0 : index
    %c0_13 = arith.constant 0 : index
    %17 = vector.load %arg6[%c0_12, %c0_13] : memref<84x10xbf16, #tpu.memory_space<vmem>>, vector<84x10xbf16>
    %cst_14 = arith.constant dense<0.000000e+00> : vector<8x10xf32>
    %18 = tpu.matmul %16, %17, %cst_14 {dimension_numbers = #tpu.dot_dimension_numbers<[1], [0], [0], [1], [0, 0, 1, 1], [], []>} : vector<8x84xbf16>, vector<84x10xbf16>, vector<8x10xf32> -> vector<8x10xf32>
    %c0_15 = arith.constant 0 : index
    %c0_16 = arith.constant 0 : index
    %19 = vector.load %arg7[%c0_15, %c0_16] : memref<1x10xf32, #tpu.memory_space<vmem>>, vector<1x10xf32>
    %20 = vector.broadcast %19 : vector<1x10xf32> to vector<8x10xf32>
    %21 = arith.addf %18, %20 : vector<8x10xf32>
    %c0_17 = arith.constant 0 : index
    %c0_18 = arith.constant 0 : index
    %22 = vector.load %arg8[%c0_17, %c0_18] : memref<8x10xf32, #tpu.memory_space<vmem>>, vector<8x10xf32>
    tpu.vector_store %arg8[%c0_17, %c0_18], %21 {strides = array<i32>} : memref<8x10xf32, #tpu.memory_space<vmem>>, vector<8x10xf32>,
    return
  }
  func.func @transform_0(%arg0: i32) -> (i32, i32) {
    %c0_i32 = arith.constant 0 : i32
    %c0_i32_0 = arith.constant 0 : i32
    return %arg0, %c0_i32 : i32, i32
  }
  func.func @transform_1(%arg0: i32) -> (i32, i32) {
    %c0_i32 = arith.constant 0 : i32
    %c0_i32_0 = arith.constant 0 : i32
    %c0_i32_1 = arith.constant 0 : i32
    return %c0_i32, %c0_i32_0 : i32, i32
  }
  func.func @transform_2(%arg0: i32) -> (i32, i32) {
    %c0_i32 = arith.constant 0 : i32
    %c0_i32_0 = arith.constant 0 : i32
    %c0_i32_1 = arith.constant 0 : i32
    return %c0_i32, %c0_i32_0 : i32, i32
  }
  func.func @transform_3(%arg0: i32) -> (i32, i32) {
    %c0_i32 = arith.constant 0 : i32
    %c0_i32_0 = arith.constant 0 : i32
    %c0_i32_1 = arith.constant 0 : i32
    return %c0_i32, %c0_i32_0 : i32, i32
  }
  func.func @transform_4(%arg0: i32) -> (i32, i32) {
    %c0_i32 = arith.constant 0 : i32
    %c0_i32_0 = arith.constant 0 : i32
    %c0_i32_1 = arith.constant 0 : i32
    return %c0_i32, %c0_i32_0 : i32, i32
  }
  func.func @transform_5(%arg0: i32) -> (i32, i32) {
    %c0_i32 = arith.constant 0 : i32
    %c0_i32_0 = arith.constant 0 : i32
    %c0_i32_1 = arith.constant 0 : i32
    return %c0_i32, %c0_i32_0 : i32, i32
  }
  func.func @transform_6(%arg0: i32) -> (i32, i32) {
    %c0_i32 = arith.constant 0 : i32
    %c0_i32_0 = arith.constant 0 : i32
    %c0_i32_1 = arith.constant 0 : i32
    return %c0_i32, %c0_i32_0 : i32, i32
  }
  func.func @transform_7(%arg0: i32) -> (i32, i32) {
    %c0_i32 = arith.constant 0 : i32
    %c0_i32_0 = arith.constant 0 : i32
    return %arg0, %c0_i32 : i32, i32
  }
}

</mosaic_0001>

<bundles_post_ra>
// kernel: convnet_forward.3
= control target key start
LH: loop header
LB: loop body
LE: loop exit
PB: predicated region body
PF: predicated region fallthrough
CT: control target
= control target key end

     0   :  { %s1478_s12 = smov 0   ;;  %s1480_s13 = smov 0   ;;  %s2730_s0 = inlined_call_operand.vmem [shape: bf16[4,456,27], index: 0, kind: input, shape index: {}]   ;;  %s2731_s1 = inlined_call_operand.vmem [shape: bf16[27,12], index: 1, kind: input, shape index: {}]   ;;  %s2732_s2 = inlined_call_operand.vmem [shape: f32[1,12], index: 2, kind: input, shape index: {}]   ;;  %s2733_s3 = inlined_call_operand.vmem [shape: f32[456,12], index: 3, kind: output, shape index: {}]  }
   0x1   :  { %s1482_s14 = smov 0  }
   0x2 LB: > { %s22_s15 = sadd.s32 1, %s1449_s13  ;;  %p1148_p0 = scmp.ge.s32.totalorder %s1453_s14, 1  ;;  %s1453_s14 = sphi %s1482_s14, %s13_s14   ;;  %s1449_s13 = sphi %s1480_s13, %s2868_s13   ;;  %s1445_s12 = sphi %s1478_s12, %s2867_s12  }
   0x3   : > { %p23_p1 = scmp.ge.s32.totalorder %s22_s15, 4  ;;  %p156_p2 = scmp.lt.s32.totalorder %s1453_s14, 5 }
   0x5   : > { %s2870_s15 = smov (%p23_p1, %s22_s15), 0  ;;  %p157_p3 = pnand %p1148_p0, %p156_p2 }
   0x7   : > { %160 = sbr.rel (%p157_p3) target bundleno = 414 (0x19e), region = 32 }
   0xe   : > { %v1400_v0 = vld [vmem:[%s2731_s1] sm:$0xff]   ;;  %v1455_v1 = vmov 0.0   ;;  %v1401_v2 = vld [vmem:[%s2731_s1 + $0x8] sm:$0x3f]   ;;  %vm511_vm0 = vcmask 1044480   ;;  %vm512_vm1 = vcmask 1045504  }
   0xf   : > { %1248 = vmatprep.subr.bf16.mxu0 %v1455_v1  ;;  %1368 = vmatprep.subr.bf16.mxu1 %v1455_v1  ;;  %p185_p4 = scmp.lt.s32.totalorder %s1445_s12, 3  ;;  %v1456_v3 = vmov 65535   ;;  %vm1457_vm2 = vmmov 0   ;;  %vm423_vm3 = vcmask 220160   ;;  %v1634_v36 = vld [vmem:[%s2732_s2] ss:$0 sm:$0xff] }
  0x10   : > { %1249 = vmatpush3.bf16.msra.mxu0 %v1400_v0  ;;  %1370 = vmatpush3.bf16.msra.mxu1 %v1400_v0  ;;  %v513_v4 = vsel %vm511_vm0, 4294967295, %v1456_v3  ;;  %p1211_p5 = scmp.ne.s32.totalorder %s1445_s12, 0 }
  0x11   : > { %1250 = vmatprep.subr.bf16.mxu0 %v1455_v1  ;;  %1252 = vmatprep.mubr.msk.bf16.mxu0 %vm1457_vm2, %v1455_v1  ;;  %v514_v5 = vsel %vm512_vm1, %v513_v4, 0  ;;  %s186_s20 = scalar_select %p185_p4, %s1445_s12, 3 }
  0x12   : > { %1369 = vmatprep.subr.bf16.mxu1 %v1455_v1  ;;  %1312 = vmatprep.mubr.msk.bf16.mxu1 %vm1457_vm2, %v1455_v1  ;;  %v516_v6 = vand.u32 %v1401_v2, %v514_v5  ;;  %vm843_vm4 = vcmask (!%p1211_p5), 97280  }
  0x13   : > { %s1372_s21 = smul.u32 228, %s186_s20 }
  0x14   : > { %1251 = vmatpush3.bf16.msra.mxu0 %v516_v6  ;;  %1371 = vmatpush3.bf16.msra.mxu1 %v516_v6 }
  0x15   : > { %s1517_s24 = scalar_lea.vmem %s2730_s0, %s1372_s21 }
  0x16   : > { %v1402_v7 = vld [vmem:[%s1517_s24] sm:$0xff]   ;;  %v1403_v8 = vld [vmem:[%s1517_s24 + $0x78] sm:$0xff]   ;;  %v1404_v9 = vld [vmem:[%s1517_s24 + $0x8] sm:$0xff]  }
  0x17   : > { %1253 = vmatmul.mubr.msk.bf16.vlgmr.msra.gmra.mrb[0].mxu0 %vm423_vm3, %v1402_v7  ;;  %1313 = vmatmul.mubr.msk.bf16.vlgmr.msra.gmra.mrb[0].mxu1 %vm423_vm3, %v1403_v8  ;;  %v1405_v10 = vld [vmem:[%s1517_s24 + $0x80] sm:$0xff]   ;;  %v1406_v11 = vld [vmem:[%s1517_s24 + $0x10] sm:$0xff]   ;;  %v1407_v12 = vld [vmem:[%s1517_s24 + $0x88] sm:$0xff]  }
  0x18   : > { %1256 = vmatprep.mubr.msk.bf16.mxu0 %vm1457_vm2, %v1455_v1  ;;  %1316 = vmatprep.mubr.msk.bf16.mxu1 %vm1457_vm2, %v1455_v1  ;;  %v1408_v13 = vld [vmem:[%s1517_s24 + $0x18] sm:$0xff]   ;;  %v1409_v14 = vld [vmem:[%s1517_s24 + $0x90] sm:$0xff]   ;;  %v1410_v15 = vld [vmem:[%s1517_s24 + $0x20] sm:$0xff]  }
  0x19   : > { %v1411_v16 = vld [vmem:[%s1517_s24 + $0x98] sm:$0xff]   ;;  %v1412_v17 = vld [vmem:[%s1517_s24 + $0x28] sm:$0xff]   ;;  %v1413_v18 = vld [vmem:[%s1517_s24 + $0xa0] sm:$0xff]  }
  0x1a   : > { %v1414_v19 = vld [vmem:[%s1517_s24 + $0x30] sm:$0xff]   ;;  %v1415_v20 = vld [vmem:[%s1517_s24 + $0xa8] sm:$0xff]   ;;  %v1416_v21 = vld [vmem:[%s1517_s24 + $0x38] sm:$0xff]  }
  0x1b   : > { %v1417_v22 = vld [vmem:[%s1517_s24 + $0xb0] sm:$0xff]   ;;  %v1418_v23 = vld [vmem:[%s1517_s24 + $0x40] sm:$0xff]   ;;  %v1419_v24 = vld [vmem:[%s1517_s24 + $0xb8] sm:$0xff]  }
  0x1c   : > { %v1420_v25 = vld [vmem:[%s1517_s24 + $0x48] sm:$0xff]   ;;  %v1421_v26 = vld [vmem:[%s1517_s24 + $0xc0] sm:$0xff]   ;;  %v1422_v27 = vld [vmem:[%s1517_s24 + $0x50] sm:$0xff]  }
  0x1d   : > { %v1423_v28 = vld [vmem:[%s1517_s24 + $0xc8] sm:$0xff]   ;;  %v1424_v29 = vld [vmem:[%s1517_s24 + $0x58] sm:$0xff]   ;;  %v1425_v30 = vld [vmem:[%s1517_s24 + $0xd0] sm:$0xff]  }
  0x1e   : > { %v1426_v31 = vld [vmem:[%s1517_s24 + $0x60] sm:$0xff]   ;;  %v1427_v32 = vld [vmem:[%s1517_s24 + $0xd8] sm:$0xff]   ;;  %v1428_v33 = vld [vmem:[%s1517_s24 + $0x68] sm:$0xff]  }
  0x1f   : > { %1257 = vmatmul.mubr.msk.bf16.gmra.mrb[4].mxu0 %vm423_vm3, %v1404_v9  ;;  %1317 = vmatmul.mubr.msk.bf16.gmra.mrb[4].mxu1 %vm423_vm3, %v1405_v10  ;;  %v1429_v34 = vld [vmem:[%s1517_s24 + $0xe0] ss:$0 sps:$4 sm:$0xff]   ;;  %v1430_v35 = vld [vmem:[%s1517_s24 + $0x70] sm:$0xff]  }
  0x20   : > { %1260 = vmatprep.mubr.msk.bf16.mxu0 %vm1457_vm2, %v1455_v1  ;;  %1320 = vmatprep.mubr.msk.bf16.mxu1 %vm1457_vm2, %v1455_v1 }
  0x27   : > { %1261 = vmatmul.mubr.msk.bf16.gmra.mrb[8].mxu0 %vm423_vm3, %v1406_v11  ;;  %1321 = vmatmul.mubr.msk.bf16.gmra.mrb[8].mxu1 %vm423_vm3, %v1407_v12 }
  0x28   : > { %1264 = vmatprep.mubr.msk.bf16.mxu0 %vm1457_vm2, %v1455_v1  ;;  %1324 = vmatprep.mubr.msk.bf16.mxu1 %vm1457_vm2, %v1455_v1 }
  0x2f   : > { %1265 = vmatmul.mubr.msk.bf16.gmra.mrb[12].mxu0 %vm423_vm3, %v1408_v13  ;;  %1325 = vmatmul.mubr.msk.bf16.gmra.mrb[12].mxu1 %vm423_vm3, %v1409_v14 }
  0x30   : > { %1268 = vmatprep.mubr.msk.bf16.mxu0 %vm1457_vm2, %v1455_v1  ;;  %1328 = vmatprep.mubr.msk.bf16.mxu1 %vm1457_vm2, %v1455_v1 }
  0x37   : > { %1269 = vmatmul.mubr.msk.bf16.gmra.mrb[16].mxu0 %vm423_vm3, %v1410_v15  ;;  %1329 = vmatmul.mubr.msk.bf16.gmra.mrb[16].mxu1 %vm423_vm3, %v1411_v16 }
  0x38   : > { %1272 = vmatprep.mubr.msk.bf16.mxu0 %vm1457_vm2, %v1455_v1  ;;  %1332 = vmatprep.mubr.msk.bf16.mxu1 %vm1457_vm2, %v1455_v1 }
  0x3f   : > { %1273 = vmatmul.mubr.msk.bf16.gmra.mrb[20].mxu0 %vm423_vm3, %v1412_v17  ;;  %1333 = vmatmul.mubr.msk.bf16.gmra.mrb[20].mxu1 %vm423_vm3, %v1413_v18 }
  0x40   : > { %1276 = vmatprep.mubr.msk.bf16.mxu0 %vm1457_vm2, %v1455_v1  ;;  %1336 = vmatprep.mubr.msk.bf16.mxu1 %vm1457_vm2, %v1455_v1 }
  0x47   : > { %1277 = vmatmul.mubr.msk.bf16.gmra.mrb[24].mxu0 %vm423_vm3, %v1414_v19  ;;  %1337 = vmatmul.mubr.msk.bf16.gmra.mrb[24].mxu1 %vm423_vm3, %v1415_v20 }
  0x48   : > { %1280 = vmatprep.mubr.msk.bf16.mxu0 %vm1457_vm2, %v1455_v1  ;;  %1340 = vmatprep.mubr.msk.bf16.mxu1 %vm1457_vm2, %v1455_v1 }
  0x4f   : > { %1281 = vmatmul.mubr.msk.bf16.gmra.mrb[28].mxu0 %vm423_vm3, %v1416_v21  ;;  %1341 = vmatmul.mubr.msk.bf16.gmra.mrb[28].mxu1 %vm423_vm3, %v1417_v22 }
  0x50   : > { %1284 = vmatprep.mubr.msk.bf16.mxu0 %vm1457_vm2, %v1455_v1  ;;  %1344 = vmatprep.mubr.msk.bf16.mxu1 %vm1457_vm2, %v1455_v1 }
  0x57   : > { %1285 = vmatmul.mubr.msk.bf16.gmra.mrb[32].mxu0 %vm423_vm3, %v1418_v23  ;;  %1345 = vmatmul.mubr.msk.bf16.gmra.mrb[32].mxu1 %vm423_vm3, %v1419_v24 }
  0x58   : > { %1288 = vmatprep.mubr.msk.bf16.mxu0 %vm1457_vm2, %v1455_v1  ;;  %1348 = vmatprep.mubr.msk.bf16.mxu1 %vm1457_vm2, %v1455_v1 }
  0x5f   : > { %1289 = vmatmul.mubr.msk.bf16.gmra.mrb[36].mxu0 %vm423_vm3, %v1420_v25  ;;  %1349 = vmatmul.mubr.msk.bf16.gmra.mrb[36].mxu1 %vm423_vm3, %v1421_v26 }
  0x60   : > { %1292 = vmatprep.mubr.msk.bf16.mxu0 %vm1457_vm2, %v1455_v1  ;;  %1352 = vmatprep.mubr.msk.bf16.mxu1 %vm1457_vm2, %v1455_v1 }
  0x67   : > { %1293 = vmatmul.mubr.msk.bf16.gmra.mrb[40].mxu0 %vm423_vm3, %v1422_v27  ;;  %1353 = vmatmul.mubr.msk.bf16.gmra.mrb[40].mxu1 %vm423_vm3, %v1423_v28 }
  0x68   : > { %1296 = vmatprep.mubr.msk.bf16.mxu0 %vm1457_vm2, %v1455_v1  ;;  %1356 = vmatprep.mubr.msk.bf16.mxu1 %vm1457_vm2, %v1455_v1 }
  0x6f   : > { %1297 = vmatmul.mubr.msk.bf16.gmra.mrb[44].mxu0 %vm423_vm3, %v1424_v29  ;;  %1357 = vmatmul.mubr.msk.bf16.gmra.mrb[44].mxu1 %vm423_vm3, %v1425_v30 }
  0x70   : > { %1300 = vmatprep.mubr.msk.bf16.mxu0 %vm1457_vm2, %v1455_v1  ;;  %1360 = vmatprep.mubr.msk.bf16.mxu1 %vm1457_vm2, %v1455_v1 }
  0x77   : > { %1301 = vmatmul.mubr.msk.bf16.gmra.mrb[48].mxu0 %vm423_vm3, %v1426_v31  ;;  %1361 = vmatmul.mubr.msk.bf16.gmra.mrb[48].mxu1 %vm423_vm3, %v1427_v32 }
  0x78   : > { %1304 = vmatprep.mubr.msk.bf16.mxu0 %vm1457_vm2, %v1455_v1  ;;  %1364 = vmatprep.mubr.msk.bf16.mxu1 %vm1457_vm2, %v1455_v1 }
  0x7f   : > { %1305 = vmatmul.mubr.msk.bf16.gmra.mrb[52].mxu0 %vm423_vm3, %v1428_v33  ;;  %1365 = vmatmul.mubr.msk.bf16.gmra.mrb[52].mxu1 %vm423_vm3, %v1429_v34 }
  0x80   : > { %1308 = vmatprep.mubr.msk.bf16.mxu0 %vm1457_vm2, %v1455_v1 }
  0x87   : > { %1309 = vmatmul.mubr.msk.bf16.gmra.mrb[56].mxu0 %vm423_vm3, %v1430_v35 }
  0xea   : > { %v552_v37 = vpop.f32.mrb[0].mxu0  ;;  %v672_v40 = vpop.f32.mrb[0].mxu1 }
  0xeb   : > { %v1637_v38 = vadd.f32 %v1634_v36, %v552_v37  ;;  %v1254_v39 = vpop.f32.mrb[1].mxu0  ;;  %v1640_v42 = vadd.f32 %v1634_v36, %v672_v40  ;;  %v1314_v43 = vpop.f32.mrb[1].mxu1 }
  0xec   : > { %v555_v41 = vpop.f32.mrb[2].mxu0  ;;  %v675_v47 = vpop.f32.mrb[2].mxu1 }
  0xed   : > { %v1644_v45 = vadd.f32 %v1634_v36, %v555_v41  ;;  %v1255_v46 = vpop.f32.mrb[3].mxu0  ;;  %v1648_v49 = vadd.f32 %v1634_v36, %v675_v47  ;;  %v1315_v50 = vpop.f32.mrb[3].mxu1 }
  0xf2   : > { %v560_v53 = vpop.f32.mrb[4].mxu0  ;;  %v680_v56 = vpop.f32.mrb[4].mxu1 }
  0xf3   : > { %v1653_v54 = vadd.f32 %v1634_v36, %v560_v53  ;;  %v1258_v55 = vpop.f32.mrb[5].mxu0  ;;  %v1656_v58 = vadd.f32 %v1634_v36, %v680_v56  ;;  %v1318_v59 = vpop.f32.mrb[5].mxu1 }
  0xf4   : > { %v563_v57 = vpop.f32.mrb[6].mxu0  ;;  %v683_v63 = vpop.f32.mrb[6].mxu1 }
  0xf5   : > { %v1660_v61 = vadd.f32 %v1634_v36, %v563_v57  ;;  %v1259_v62 = vpop.f32.mrb[7].mxu0  ;;  %v1664_v1 = vadd.f32 %v1634_v36, %v683_v63  ;;  %v1319_v2 = vpop.f32.mrb[7].mxu1 }
  0xfa   : > { %v568_v5 = vpop.f32.mrb[8].mxu0  ;;  %v688_v8 = vpop.f32.mrb[8].mxu1 }
  0xfb   : > { %v1669_v6 = vadd.f32 %v1634_v36, %v568_v5  ;;  %v1262_v7 = vpop.f32.mrb[9].mxu0  ;;  %v1672_v10 = vadd.f32 %v1634_v36, %v688_v8  ;;  %v1322_v11 = vpop.f32.mrb[9].mxu1 }
  0xfc   : > { %v571_v9 = vpop.f32.mrb[10].mxu0  ;;  %v691_v15 = vpop.f32.mrb[10].mxu1 }
  0xfd   : > { %v1676_v13 = vadd.f32 %v1634_v36, %v571_v9  ;;  %v1263_v14 = vpop.f32.mrb[11].mxu0  ;;  %v1680_v17 = vadd.f32 %v1634_v36, %v691_v15  ;;  %v1323_v18 = vpop.f32.mrb[11].mxu1 }
 0x102   : > { %v576_v21 = vpop.f32.mrb[12].mxu0  ;;  %v696_v24 = vpop.f32.mrb[12].mxu1 }
 0x103   : > { %v1685_v22 = vadd.f32 %v1634_v36, %v576_v21  ;;  %v1266_v23 = vpop.f32.mrb[13].mxu0  ;;  %v1688_v26 = vadd.f32 %v1634_v36, %v696_v24  ;;  %v1326_v27 = vpop.f32.mrb[13].mxu1 }
 0x104   : > { %v579_v25 = vpop.f32.mrb[14].mxu0  ;;  %v699_v31 = vpop.f32.mrb[14].mxu1 }
 0x105   : > { %v1692_v29 = vadd.f32 %v1634_v36, %v579_v25  ;;  %v1267_v30 = vpop.f32.mrb[15].mxu0  ;;  %v1696_v33 = vadd.f32 %v1634_v36, %v699_v31  ;;  %v1327_v34 = vpop.f32.mrb[15].mxu1 }
 0x10a   : > { %v584_v39 = vpop.f32.mrb[16].mxu0  ;;  %v704_v43 = vpop.f32.mrb[16].mxu1 }
 0x10b   : > { %v1701_v40 = vadd.f32 %v1634_v36, %v584_v39  ;;  %v1270_v41 = vpop.f32.mrb[17].mxu0  ;;  %v1704_v47 = vadd.f32 %v1634_v36, %v704_v43  ;;  %v1330_v50 = vpop.f32.mrb[17].mxu1 }
 0x10c   : > { %v587_v46 = vpop.f32.mrb[18].mxu0  ;;  %v707_v57 = vpop.f32.mrb[18].mxu1 }
 0x10d   : > { %v1708_v55 = vadd.f32 %v1634_v36, %v587_v46  ;;  %v1271_v56 = vpop.f32.mrb[19].mxu0  ;;  %v1712_v62 = vadd.f32 %v1634_v36, %v707_v57  ;;  %v1331_v63 = vpop.f32.mrb[19].mxu1 }
 0x112   : > { %v592_v7 = vpop.f32.mrb[20].mxu0  ;;  %v712_v11 = vpop.f32.mrb[20].mxu1 }
 0x113   : > { %v1717_v8 = vadd.f32 %v1634_v36, %v592_v7  ;;  %v1274_v9 = vpop.f32.mrb[21].mxu0  ;;  %v1720_v15 = vadd.f32 %v1634_v36, %v712_v11  ;;  %v1334_v18 = vpop.f32.mrb[21].mxu1 }
 0x114   : > { %v595_v14 = vpop.f32.mrb[22].mxu0  ;;  %v715_v25 = vpop.f32.mrb[22].mxu1 }
 0x115   : > { %v1724_v23 = vadd.f32 %v1634_v36, %v595_v14  ;;  %v1275_v24 = vpop.f32.mrb[23].mxu0  ;;  %v1728_v30 = vadd.f32 %v1634_v36, %v715_v25  ;;  %v1335_v31 = vpop.f32.mrb[23].mxu1 }
 0x11a   : > { %v600_v41 = vpop.f32.mrb[24].mxu0  ;;  %v720_v50 = vpop.f32.mrb[24].mxu1 }
 0x11b   : > { %v1733_v43 = vadd.f32 %v1634_v36, %v600_v41  ;;  %v1278_v46 = vpop.f32.mrb[25].mxu0  ;;  %v1736_v57 = vadd.f32 %v1634_v36, %v720_v50  ;;  %v1338_v63 = vpop.f32.mrb[25].mxu1 }
 0x11c   : > { %v603_v56 = vpop.f32.mrb[26].mxu0  ;;  %v723_v14 = vpop.f32.mrb[26].mxu1 }
 0x11d   : > { %v1740_v9 = vadd.f32 %v1634_v36, %v603_v56  ;;  %v1279_v11 = vpop.f32.mrb[27].mxu0  ;;  %v1744_v24 = vadd.f32 %v1634_v36, %v723_v14  ;;  %v1339_v25 = vpop.f32.mrb[27].mxu1 }
 0x122   : > { %v608_v46 = vpop.f32.mrb[28].mxu0  ;;  %v728_v39 = vpop.f32.mrb[28].mxu1 }
 0x123   : > { %v1749_v50 = vadd.f32 %v1634_v36, %v608_v46  ;;  %v1282_v63 = vpop.f32.mrb[29].mxu0  ;;  %v1752_v11 = vadd.f32 %v1634_v36, %v728_v39  ;;  %v1342_v27 = vpop.f32.mrb[29].mxu1 }
 0x124   : > { %v611_v56 = vpop.f32.mrb[30].mxu0  ;;  %v731_v5 = vpop.f32.mrb[30].mxu1 }
 0x125   : > { %v1756_v14 = vadd.f32 %v1634_v36, %v611_v56  ;;  %v1283_v25 = vpop.f32.mrb[31].mxu0  ;;  %v1760_v59 = vadd.f32 %v1634_v36, %v731_v5  ;;  %v1343_v46 = vpop.f32.mrb[31].mxu1 }
 0x12a   : > { %v616_v39 = vpop.f32.mrb[32].mxu0  ;;  %v736_v20 = vpop.f32.mrb[32].mxu1 }
 0x12b   : > { %v1765_v27 = vadd.f32 %v1634_v36, %v616_v39  ;;  %v1286_v32 = vpop.f32.mrb[33].mxu0  ;;  %v1768_v25 = vadd.f32 %v1634_v36, %v736_v20  ;;  %v1346_v16 = vpop.f32.mrb[33].mxu1 }
 0x12c   : > { %v619_v56 = vpop.f32.mrb[34].mxu0  ;;  %v739_v4 = vpop.f32.mrb[34].mxu1 }
 0x12d   : > { %v1772_v5 = vadd.f32 %v1634_v36, %v619_v56  ;;  %v1287_v46 = vpop.f32.mrb[35].mxu0  ;;  %v1776_v0 = vadd.f32 %v1634_v36, %v739_v4  ;;  %v1347_v39 = vpop.f32.mrb[35].mxu1 }
 0x132   : > { %v624_v20 = vpop.f32.mrb[36].mxu0  ;;  %v744_v41 = vpop.f32.mrb[36].mxu1 }
 0x133   : > { %v1781_v16 = vadd.f32 %v1634_v36, %v624_v20  ;;  %v1290_v48 = vpop.f32.mrb[37].mxu0  ;;  %v1784_v46 = vadd.f32 %v1634_v36, %v744_v41  ;;  %v1350_v63 = vpop.f32.mrb[37].mxu1 }
 0x134   : > { %v627_v56 = vpop.f32.mrb[38].mxu0  ;;  %v747_v32 = vpop.f32.mrb[38].mxu1 }
 0x135   : > { %v1788_v4 = vadd.f32 %v1634_v36, %v627_v56  ;;  %v1291_v39 = vpop.f32.mrb[39].mxu0  ;;  %v1792_v18 = vadd.f32 %v1634_v36, %v747_v32  ;;  %v1351_v20 = vpop.f32.mrb[39].mxu1 }
 0x13a   : > { %v632_v41 = vpop.f32.mrb[40].mxu0  ;;  %v752_v7 = vpop.f32.mrb[40].mxu1 }
 0x13b   : > { %v1797_v63 = vadd.f32 %v1634_v36, %v632_v41  ;;  %v1294_v37 = vpop.f32.mrb[41].mxu0  ;;  %v1800_v39 = vadd.f32 %v1634_v36, %v752_v7  ;;  %v1354_v34 = vpop.f32.mrb[41].mxu1 }
 0x13c   : > { %v635_v56 = vpop.f32.mrb[42].mxu0  ;;  %v755_v48 = vpop.f32.mrb[42].mxu1 }
 0x13d   : > { %v1804_v32 = vadd.f32 %v1634_v36, %v635_v56  ;;  %v1295_v20 = vpop.f32.mrb[43].mxu0  ;;  %v1808_v21 = vadd.f32 %v1634_v36, %v755_v48  ;;  %v1355_v41 = vpop.f32.mrb[43].mxu1 }
 0x142   : > { %v640_v7 = vpop.f32.mrb[44].mxu0  ;;  %v760_v53 = vpop.f32.mrb[44].mxu1 }
 0x143   : > { %v1813_v34 = vadd.f32 %v1634_v36, %v640_v7  ;;  %v1298_v52 = vpop.f32.mrb[45].mxu0  ;;  %v1816_v20 = vadd.f32 %v1634_v36, %v760_v53  ;;  %v1358_v35 = vpop.f32.mrb[45].mxu1 }
 0x144   : > { %v643_v56 = vpop.f32.mrb[46].mxu0  ;;  %v763_v37 = vpop.f32.mrb[46].mxu1 }
 0x145   : > { %2743 = vst [vmem:[#allocation2_spill] sm:$0xff] %v1816_v20  ;;  %v1820_v48 = vadd.f32 %v1634_v36, %v643_v56  ;;  %v1299_v41 = vpop.f32.mrb[47].mxu0  ;;  %v1824_v28 = vadd.f32 %v1634_v36, %v763_v37  ;;  %v1359_v7 = vpop.f32.mrb[47].mxu1 }
 0x147   : > { %2744 = vst [vmem:[#allocation3_spill] sm:$0xff] %v1824_v28 }
 0x14a   : > { %v648_v53 = vpop.f32.mrb[48].mxu0  ;;  %v768_v12 = vpop.f32.mrb[48].mxu1 }
 0x14b   : > { %v1829_v35 = vadd.f32 %v1634_v36, %v648_v53  ;;  %v1302_v31 = vpop.f32.mrb[49].mxu0  ;;  %v1832_v41 = vadd.f32 %v1634_v36, %v768_v12  ;;  %v1362_v3 = vpop.f32.mrb[49].mxu1 }
 0x14c   : > { %v651_v56 = vpop.f32.mrb[50].mxu0  ;;  %v771_v52 = vpop.f32.mrb[50].mxu1 }
 0x14d   : > { %2745 = vst [vmem:[#allocation4_spill] sm:$0xff] %v1832_v41  ;;  %v1836_v37 = vadd.f32 %v1634_v36, %v651_v56  ;;  %v1303_v7 = vpop.f32.mrb[51].mxu0  ;;  %v1840_v60 = vadd.f32 %v1634_v36, %v771_v52  ;;  %v1363_v53 = vpop.f32.mrb[51].mxu1 }
 0x14f   : > { %2746 = vst [vmem:[#allocation5_spill] sm:$0xff] %v1840_v60 }
 0x152   : > { %v656_v12 = vpop.f32.mrb[52].mxu0  ;;  %v776_v44 = vpop.f32.mrb[52].mxu1 }
 0x153   : > { %v1845_v3 = vadd.f32 %v1634_v36, %v656_v12  ;;  %v1306_v2 = vpop.f32.mrb[53].mxu0  ;;  %v1848_v7 = vadd.f32 %v1634_v36, %v776_v44  ;;  %v1366_v28 = vpop.f32.mrb[53].mxu1 }
 0x154   : > { %v659_v56 = vpop.f32.mrb[54].mxu0  ;;  %v779_v31 = vpop.f32.mrb[54].mxu1 }
 0x155   : > { %2747 = vst [vmem:[#allocation6_spill] sm:$0xff] %v1848_v7  ;;  %v1852_v52 = vadd.f32 %v1634_v36, %v659_v56  ;;  %v1307_v53 = vpop.f32.mrb[55].mxu0  ;;  %v2738_v51 = vmax.f32 %v1848_v7, 0.0  ;;  %v1367_v60 = vpop.f32.mrb[55].mxu1  ;;  %v2752_v31 = vmax.f32 (!%p1211_p5), %v1669_v6, 0.0 }
 0x156   : > { %v2748_v60 = vmax.f32 (!%p1211_p5), %v1637_v38, 0.0 }
 0x157   : > { %v2741_v12 = vmax.f32 %v1852_v52, 0.0  ;;  %848 = vst.msk [vmem:[%s2733_s3 + $0x20] sm:$0xff] (!%p1211_p5), %vm843_vm4, %v2752_v31  ;;  %v2759_v31 = vmax.f32 (!%p1211_p5), %v1724_v23, 0.0  ;;  %900 = vst.msk [vmem:[%s2733_s3 + $0x1c0] sm:$0xff] (!%p1211_p5), %vm843_vm4, %v2738_v51 }
 0x158   : > { %844 = vst.msk [vmem:[%s2733_s3] sm:$0xff] (!%p1211_p5), %vm843_vm4, %v2748_v60  ;;  %v2755_v60 = vmax.f32 (!%p1211_p5), %v1692_v29, 0.0 }
 0x159   : > { %842 = sbr.rel (%p1211_p5) target bundleno = 375 (0x177), region = 36  ;;  %855 = vst.msk [vmem:[%s2733_s3 + $0x58] sm:$0xff] (!%p1211_p5), %vm843_vm4, %v2759_v31  ;;  %v2766_v31 = vmax.f32 (!%p1211_p5), %v1781_v16, 0.0  ;;  %871 = vst.msk [vmem:[%s2733_s3 + $0xd8] sm:$0xff] (!%p1211_p5), %vm843_vm4, %v2741_v12 }
 0x15a   : > { %v664_v41 = vpop.f32.mrb[56].mxu0  ;;  %851 = vst.msk [vmem:[%s2733_s3 + $0x38] sm:$0xff] (!%p1211_p5), %vm843_vm4, %v2755_v60  ;;  %v2762_v60 = vmax.f32 (!%p1211_p5), %v1749_v50, 0.0 }
 0x15b   : > { %v1857_v2 = vadd.f32 %v1634_v36, %v664_v41  ;;  %v1310_v20 = vpop.f32.mrb[57].mxu0  ;;  %v2751_v41 = vmax.f32 (!%p1211_p5), %v1660_v61, 0.0  ;;  %862 = vst.msk [vmem:[%s2733_s3 + $0x90] sm:$0xff] (!%p1211_p5), %vm843_vm4, %v2766_v31  ;;  %v2773_v31 = vmax.f32 (!%p1211_p5), %v1836_v37, 0.0 }
 0x15c   : > { %v667_v44 = vpop.f32.mrb[58].mxu0  ;;  %v2749_v20 = vmax.f32 (!%p1211_p5), %v1644_v45, 0.0  ;;  %858 = vst.msk [vmem:[%s2733_s3 + $0x70] sm:$0xff] (!%p1211_p5), %vm843_vm4, %v2762_v60  ;;  %v2769_v60 = vmax.f32 (!%p1211_p5), %v1804_v32, 0.0 }
 0x15d   : > { %v2740_v28 = vmax.f32 %v1857_v2, 0.0  ;;  %v1861_v19 = vadd.f32 %v1634_v36, %v667_v44  ;;  %v1311_v56 = vpop.f32.mrb[59].mxu0  ;;  %v2750_v36 = vmax.f32 (!%p1211_p5), %v1653_v54, 0.0  ;;  %847 = vst.msk [vmem:[%s2733_s3 + $0x18] sm:$0xff] (!%p1211_p5), %vm843_vm4, %v2751_v41  ;;  %v2753_v44 = vmax.f32 (!%p1211_p5), %v1676_v13, 0.0  ;;  %869 = vst.msk [vmem:[%s2733_s3 + $0xc8] sm:$0xff] (!%p1211_p5), %vm843_vm4, %v2773_v31 }
 0x15e   : > { %845 = vst.msk [vmem:[%s2733_s3 + $0x8] sm:$0xff] (!%p1211_p5), %vm843_vm4, %v2749_v20  ;;  %v2754_v56 = vmax.f32 (!%p1211_p5), %v1685_v22, 0.0  ;;  %v2756_v20 = vmax.f32 (!%p1211_p5), %v1701_v40, 0.0  ;;  %v2758_v41 = vmax.f32 (!%p1211_p5), %v1717_v8, 0.0  ;;  %865 = vst.msk [vmem:[%s2733_s3 + $0xa8] sm:$0xff] (!%p1211_p5), %vm843_vm4, %v2769_v60  ;;  %v2776_v60 = vmax.f32 (!%p1211_p5), %v1648_v49, 0.0 }
 0x15f   : > { %v2739_v53 = vmax.f32 %v1861_v19, 0.0  ;;  %846 = vst.msk [vmem:[%s2733_s3 + $0x10] sm:$0xff] (!%p1211_p5), %vm843_vm4, %v2750_v36  ;;  %849 = vst.msk [vmem:[%s2733_s3 + $0x28] sm:$0xff] (!%p1211_p5), %vm843_vm4, %v2753_v44  ;;  %v2757_v36 = vmax.f32 (!%p1211_p5), %v1708_v55, 0.0  ;;  %v2760_v44 = vmax.f32 (!%p1211_p5), %v1733_v43, 0.0  ;;  %v2780_v31 = vmax.f32 (!%p1211_p5), %v1680_v17, 0.0 }
 0x160   : > { %850 = vst.msk [vmem:[%s2733_s3 + $0x30] sm:$0xff] %vm843_vm4, %v2754_v56  ;;  %852 = vst.msk [vmem:[%s2733_s3 + $0x40] sm:$0xff] %vm843_vm4, %v2756_v20  ;;  %v2761_v56 = vmax.f32 %v1740_v9, 0.0  ;;  %v2763_v20 = vmax.f32 %v1756_v14, 0.0 }
 0x161   : > { %853 = vst.msk [vmem:[%s2733_s3 + $0x48] sm:$0xff] %vm843_vm4, %v2757_v36  ;;  %854 = vst.msk [vmem:[%s2733_s3 + $0x50] sm:$0xff] %vm843_vm4, %v2758_v41  ;;  %v2764_v36 = vmax.f32 %v1765_v27, 0.0  ;;  %v2765_v41 = vmax.f32 %v1772_v5, 0.0 }
 0x162   : > { %856 = vst.msk [vmem:[%s2733_s3 + $0x60] sm:$0xff] %vm843_vm4, %v2760_v44  ;;  %857 = vst.msk [vmem:[%s2733_s3 + $0x68] sm:$0xff] %vm843_vm4, %v2761_v56  ;;  %v2767_v44 = vmax.f32 %v1788_v4, 0.0  ;;  %v2768_v56 = vmax.f32 %v1797_v63, 0.0 }
 0x163   : > { %859 = vst.msk [vmem:[%s2733_s3 + $0x78] sm:$0xff] %vm843_vm4, %v2763_v20  ;;  %860 = vst.msk [vmem:[%s2733_s3 + $0x80] sm:$0xff] %vm843_vm4, %v2764_v36  ;;  %v2770_v20 = vmax.f32 %v1813_v34, 0.0  ;;  %v2771_v36 = vmax.f32 %v1820_v48, 0.0 }
 0x164   : > { %861 = vst.msk [vmem:[%s2733_s3 + $0x88] sm:$0xff] %vm843_vm4, %v2765_v41  ;;  %863 = vst.msk [vmem:[%s2733_s3 + $0x98] sm:$0xff] %vm843_vm4, %v2767_v44  ;;  %v2772_v41 = vmax.f32 %v1829_v35, 0.0  ;;  %v2774_v44 = vmax.f32 %v1845_v3, 0.0 }
 0x165   : > { %864 = vst.msk [vmem:[%s2733_s3 + $0xa0] sm:$0xff] %vm843_vm4, %v2768_v56  ;;  %866 = vst.msk [vmem:[%s2733_s3 + $0xb0] sm:$0xff] %vm843_vm4, %v2770_v20  ;;  %v2775_v56 = vmax.f32 %v1640_v42, 0.0  ;;  %v2777_v20 = vmax.f32 %v1656_v58, 0.0 }
 0x166   : > { %867 = vst.msk [vmem:[%s2733_s3 + $0xb8] sm:$0xff] %vm843_vm4, %v2771_v36  ;;  %868 = vst.msk [vmem:[%s2733_s3 + $0xc0] sm:$0xff] %vm843_vm4, %v2772_v41  ;;  %v2778_v36 = vmax.f32 %v1664_v1, 0.0  ;;  %v2779_v41 = vmax.f32 %v1672_v10, 0.0 }
 0x167   : > { %870 = vst.msk [vmem:[%s2733_s3 + $0xd0] sm:$0xff] %vm843_vm4, %v2774_v44  ;;  %872 = vst.msk [vmem:[%s2733_s3 + $0xe0] sm:$0xff] %vm843_vm4, %v2740_v28  ;;  %v2781_v44 = vmax.f32 %v1688_v26, 0.0 }
 0x168   : > { %873 = vst.msk [vmem:[%s2733_s3 + $0xe8] sm:$0xff] %vm843_vm4, %v2739_v53  ;;  %874 = vst.msk [vmem:[%s2733_s3 + $0xf0] sm:$0xff] %vm843_vm4, %v2775_v56  ;;  %v2782_v56 = vmax.f32 %v1696_v33, 0.0 }
 0x169   : > { %875 = vst.msk [vmem:[%s2733_s3 + $0xf8] sm:$0xff] %vm843_vm4, %v2776_v60  ;;  %876 = vst.msk [vmem:[%s2733_s3 + $0x100] sm:$0xff] %vm843_vm4, %v2777_v20  ;;  %v2783_v60 = vmax.f32 %v1704_v47, 0.0  ;;  %v2784_v20 = vmax.f32 %v1712_v62, 0.0 }
 0x16a   : > { %877 = vst.msk [vmem:[%s2733_s3 + $0x108] sm:$0xff] %vm843_vm4, %v2778_v36  ;;  %878 = vst.msk [vmem:[%s2733_s3 + $0x110] sm:$0xff] %vm843_vm4, %v2779_v41  ;;  %v2785_v36 = vmax.f32 %v1720_v15, 0.0  ;;  %v2786_v41 = vmax.f32 %v1728_v30, 0.0 }
 0x16b   : > { %879 = vst.msk [vmem:[%s2733_s3 + $0x118] sm:$0xff] %vm843_vm4, %v2780_v31  ;;  %880 = vst.msk [vmem:[%s2733_s3 + $0x120] sm:$0xff] %vm843_vm4, %v2781_v44  ;;  %v2787_v31 = vmax.f32 %v1736_v57, 0.0  ;;  %v2788_v44 = vmax.f32 %v1744_v24, 0.0 }
 0x16c   : > { %881 = vst.msk [vmem:[%s2733_s3 + $0x128] sm:$0xff] %vm843_vm4, %v2782_v56  ;;  %882 = vst.msk [vmem:[%s2733_s3 + $0x130] sm:$0xff] %vm843_vm4, %v2783_v60  ;;  %v2789_v56 = vmax.f32 %v1752_v11, 0.0  ;;  %v2790_v60 = vmax.f32 %v1760_v59, 0.0 }
 0x16d   : > { %883 = vst.msk [vmem:[%s2733_s3 + $0x138] sm:$0xff] %vm843_vm4, %v2784_v20  ;;  %884 = vst.msk [vmem:[%s2733_s3 + $0x140] sm:$0xff] %vm843_vm4, %v2785_v36  ;;  %v2791_v20 = vmax.f32 %v1768_v25, 0.0  ;;  %v2792_v36 = vmax.f32 %v1776_v0, 0.0 }
 0x16e   : > { %885 = vst.msk [vmem:[%s2733_s3 + $0x148] sm:$0xff] %vm843_vm4, %v2786_v41  ;;  %886 = vst.msk [vmem:[%s2733_s3 + $0x150] sm:$0xff] %vm843_vm4, %v2787_v31  ;;  %v2793_v41 = vmax.f32 %v1784_v46, 0.0  ;;  %v2794_v31 = vmax.f32 %v1792_v18, 0.0 }
 0x16f   : > { %887 = vst.msk [vmem:[%s2733_s3 + $0x158] sm:$0xff] %vm843_vm4, %v2788_v44  ;;  %888 = vst.msk [vmem:[%s2733_s3 + $0x160] sm:$0xff] %vm843_vm4, %v2789_v56  ;;  %v2795_v44 = vmax.f32 %v1800_v39, 0.0  ;;  %v2796_v56 = vmax.f32 %v1808_v21, 0.0 }
 0x170   : > { %889 = vst.msk [vmem:[%s2733_s3 + $0x168] sm:$0xff] %vm843_vm4, %v2790_v60  ;;  %890 = vst.msk [vmem:[%s2733_s3 + $0x170] sm:$0xff] %vm843_vm4, %v2791_v20  ;;  %v2797_v60 = vld [vmem:[#allocation2_spill] sm:$0xff] }
 0x171   : > { %891 = vst.msk [vmem:[%s2733_s3 + $0x178] sm:$0xff] %vm843_vm4, %v2792_v36  ;;  %892 = vst.msk [vmem:[%s2733_s3 + $0x180] sm:$0xff] %vm843_vm4, %v2793_v41  ;;  %v2798_v20 = vmax.f32 %v2797_v60, 0.0  ;;  %v2799_v36 = vld [vmem:[#allocation3_spill] sm:$0xff] }
 0x172   : > { %893 = vst.msk [vmem:[%s2733_s3 + $0x188] sm:$0xff] %vm843_vm4, %v2794_v31  ;;  %894 = vst.msk [vmem:[%s2733_s3 + $0x190] sm:$0xff] %vm843_vm4, %v2795_v44  ;;  %v2800_v41 = vmax.f32 %v2799_v36, 0.0  ;;  %v2801_v31 = vld [vmem:[#allocation4_spill] sm:$0xff] }
 0x173   : > { %895 = vst.msk [vmem:[%s2733_s3 + $0x198] sm:$0xff] %vm843_vm4, %v2796_v56  ;;  %896 = vst.msk [vmem:[%s2733_s3 + $0x1a0] sm:$0xff] %vm843_vm4, %v2798_v20  ;;  %v2802_v44 = vmax.f32 %v2801_v31, 0.0  ;;  %v2803_v56 = vld [vmem:[#allocation5_spill] sm:$0xff] }
 0x174   : > { %897 = vst.msk [vmem:[%s2733_s3 + $0x1a8] sm:$0xff] %vm843_vm4, %v2800_v41  ;;  %v2804_v60 = vmax.f32 %v2803_v56, 0.0 }
 0x175   : > { %898 = vst.msk [vmem:[%s2733_s3 + $0x1b0] sm:$0xff] %vm843_vm4, %v2802_v44 }
 0x176   : > { %899 = vst.msk [vmem:[%s2733_s3 + $0x1b8] sm:$0xff] %vm843_vm4, %v2804_v60 }
 0x177 PF: > { %p1212_p6 = scmp.le.s32.totalorder %s1445_s12, 0 }
 0x178   : > { %v905_v20 = vld [vmem:[%s2733_s3] sm:$0xff] (!%p1212_p6)  ;;  %vm1019_vm5 = vcmask (!%p1212_p6), 97280   ;;  %v2805_v31 = vmax.f32 (!%p1212_p6), %v1637_v38, 0.0  ;;  %v2806_v56 = vmax.f32 (!%p1212_p6), %v1644_v45, 0.0  ;;  %v2807_v51 = vmax.f32 (!%p1212_p6), %v1653_v54, 0.0 }
 0x179   : > { %904 = sbr.rel (%p1212_p6) target bundleno = 414 (0x19e), region = 40  ;;  %v909_v12 = vld [vmem:[%s2733_s3 + $0x20] sm:$0xff] (!%p1212_p6)  ;;  %v2808_v38 = vmax.f32 (!%p1212_p6), %v1660_v61, 0.0  ;;  %v2809_v45 = vmax.f32 (!%p1212_p6), %v1669_v6, 0.0  ;;  %v2811_v61 = vmax.f32 (!%p1212_p6), %v1685_v22, 0.0  ;;  %v2814_v22 = vmax.f32 (!%p1212_p6), %v1708_v55, 0.0 }
 0x17a   : > { %v962_v44 = vmax.f32 (!%p1212_p6), %v905_v20, %v2805_v31  ;;  %v912_v31 = vld [vmem:[%s2733_s3 + $0x38] sm:$0xff] (!%p1212_p6)  ;;  %v2817_v55 = vmax.f32 (!%p1212_p6), %v1733_v43, 0.0  ;;  %v2820_v43 = vmax.f32 (!%p1212_p6), %v1756_v14, 0.0  ;;  %v2823_v14 = vmax.f32 (!%p1212_p6), %v1781_v16, 0.0 }
 0x17b   : > { %v908_v28 = vld [vmem:[%s2733_s3 + $0x18] sm:$0xff] (!%p1212_p6)  ;;  %v2826_v16 = vmax.f32 (!%p1212_p6), %v1804_v32, 0.0  ;;  %v2829_v32 = vmax.f32 (!%p1212_p6), %v1829_v35, 0.0  ;;  %v2832_v35 = vmax.f32 (!%p1212_p6), %v1852_v52, 0.0 }
 0x17c   : > { %v906_v36 = vld [vmem:[%s2733_s3 + $0x8] sm:$0xff] (!%p1212_p6)  ;;  %v965_v20 = vmax.f32 (!%p1212_p6), %v908_v28, %v2808_v38  ;;  %1020 = vst.msk [vmem:[%s2733_s3] sm:$0xff] (!%p1212_p6), %vm1019_vm5, %v962_v44 }
 0x17d   : > { %v907_v41 = vld [vmem:[%s2733_s3 + $0x10] sm:$0xff] (!%p1212_p6)  ;;  %v963_v60 = vmax.f32 (!%p1212_p6), %v906_v36, %v2806_v56  ;;  %v910_v7 = vld [vmem:[%s2733_s3 + $0x28] sm:$0xff] (!%p1212_p6)  ;;  %v966_v36 = vmax.f32 (!%p1212_p6), %v909_v12, %v2809_v45  ;;  %v913_v56 = vld [vmem:[%s2733_s3 + $0x40] sm:$0xff] (!%p1212_p6)  ;;  %v2813_v12 = vmax.f32 (!%p1212_p6), %v1701_v40, 0.0  ;;  %v2815_v40 = vmax.f32 (!%p1212_p6), %v1717_v8, 0.0 }
 0x17e   : > { %v964_v53 = vmax.f32 (!%p1212_p6), %v907_v41, %v2807_v51  ;;  %v2810_v51 = vmax.f32 (!%p1212_p6), %v1676_v13, 0.0  ;;  %v911_v41 = vld [vmem:[%s2733_s3 + $0x30] sm:$0xff] (!%p1212_p6)  ;;  %v2812_v13 = vmax.f32 (!%p1212_p6), %v1692_v29, 0.0  ;;  %v914_v44 = vld [vmem:[%s2733_s3 + $0x48] sm:$0xff] (!%p1212_p6)  ;;  %1023 = vst.msk [vmem:[%s2733_s3 + $0x18] sm:$0xff] (!%p1212_p6), %vm1019_vm5, %v965_v20  ;;  %v2816_v45 = vmax.f32 (!%p1212_p6), %v1724_v23, 0.0 }
 0x17f   : > { %1021 = vst.msk [vmem:[%s2733_s3 + $0x8] sm:$0xff] (!%p1212_p6), %vm1019_vm5, %v963_v60  ;;  %v968_v6 = vmax.f32 (!%p1212_p6), %v911_v41, %v2811_v61  ;;  %v970_v28 = vmax.f32 (!%p1212_p6), %v913_v56, %v2813_v12  ;;  %v915_v60 = vld [vmem:[%s2733_s3 + $0x50] sm:$0xff] (!%p1212_p6)  ;;  %1024 = vst.msk [vmem:[%s2733_s3 + $0x20] sm:$0xff] (!%p1212_p6), %vm1019_vm5, %v966_v36  ;;  %v971_v29 = vmax.f32 (!%p1212_p6), %v914_v44, %v2814_v22  ;;  %v917_v20 = vld [vmem:[%s2733_s3 + $0x60] sm:$0xff] (!%p1212_p6)  ;;  %v2818_v23 = vmax.f32 (!%p1212_p6), %v1740_v9, 0.0 }
 0x180   : > { %v967_v54 = vmax.f32 %v910_v7, %v2810_v51  ;;  %1022 = vst.msk [vmem:[%s2733_s3 + $0x10] sm:$0xff] %vm1019_vm5, %v964_v53  ;;  %v969_v7 = vmax.f32 %v912_v31, %v2812_v13  ;;  %v916_v53 = vld [vmem:[%s2733_s3 + $0x58] sm:$0xff]  ;;  %v972_v38 = vmax.f32 %v915_v60, %v2815_v40  ;;  %v918_v36 = vld [vmem:[%s2733_s3 + $0x68] sm:$0xff]  ;;  %v974_v8 = vmax.f32 %v917_v20, %v2817_v55  ;;  %v923_v44 = vld [vmem:[%s2733_s3 + $0x90] sm:$0xff] }
 0x181   : > { %v973_v51 = vmax.f32 %v916_v53, %v2816_v45  ;;  %1026 = vst.msk [vmem:[%s2733_s3 + $0x30] sm:$0xff] %vm1019_vm5, %v968_v6  ;;  %1028 = vst.msk [vmem:[%s2733_s3 + $0x40] sm:$0xff] %vm1019_vm5, %v970_v28  ;;  %v975_v41 = vmax.f32 %v918_v36, %v2818_v23  ;;  %v2819_v31 = vmax.f32 %v1749_v50, 0.0  ;;  %v920_v61 = vld [vmem:[%s2733_s3 + $0x78] sm:$0xff]  ;;  %v921_v6 = vld [vmem:[%s2733_s3 + $0x80] sm:$0xff]  ;;  %v2821_v50 = vmax.f32 %v1765_v27, 0.0 }
 0x182   : > { %1025 = vst.msk [vmem:[%s2733_s3 + $0x28] sm:$0xff] %vm1019_vm5, %v967_v54  ;;  %v919_v54 = vld [vmem:[%s2733_s3 + $0x70] sm:$0xff]  ;;  %1027 = vst.msk [vmem:[%s2733_s3 + $0x38] sm:$0xff] %vm1019_vm5, %v969_v7  ;;  %v922_v13 = vld [vmem:[%s2733_s3 + $0x88] sm:$0xff]  ;;  %v977_v9 = vmax.f32 %v920_v61, %v2820_v43  ;;  %v2822_v12 = vmax.f32 %v1772_v5, 0.0  ;;  %v980_v27 = vmax.f32 %v923_v44, %v2823_v14  ;;  %v2824_v5 = vmax.f32 %v1788_v4, 0.0 }
 0x183   : > { %v976_v56 = vmax.f32 %v919_v54, %v2819_v31  ;;  %1029 = vst.msk [vmem:[%s2733_s3 + $0x48] sm:$0xff] %vm1019_vm5, %v971_v29  ;;  %1030 = vst.msk [vmem:[%s2733_s3 + $0x50] sm:$0xff] %vm1019_vm5, %v972_v38  ;;  %v978_v7 = vmax.f32 %v921_v6, %v2821_v50  ;;  %v924_v60 = vld [vmem:[%s2733_s3 + $0x98] sm:$0xff]  ;;  %v925_v53 = vld [vmem:[%s2733_s3 + $0xa0] sm:$0xff]  ;;  %v2825_v29 = vmax.f32 %v1797_v63, 0.0  ;;  %v2827_v63 = vmax.f32 %v1813_v34, 0.0 }
 0x184   : > { %1031 = vst.msk [vmem:[%s2733_s3 + $0x58] sm:$0xff] %vm1019_vm5, %v973_v51  ;;  %v979_v28 = vmax.f32 %v922_v13, %v2822_v12  ;;  %1032 = vst.msk [vmem:[%s2733_s3 + $0x60] sm:$0xff] %vm1019_vm5, %v974_v8  ;;  %v981_v22 = vmax.f32 %v924_v60, %v2824_v5  ;;  %v926_v38 = vld [vmem:[%s2733_s3 + $0xa8] sm:$0xff]  ;;  %v927_v45 = vld [vmem:[%s2733_s3 + $0xb0] sm:$0xff]  ;;  %v2828_v36 = vmax.f32 %v1820_v48, 0.0  ;;  %v2830_v48 = vmax.f32 %v1836_v37, 0.0 }
 0x185   : > { %1033 = vst.msk [vmem:[%s2733_s3 + $0x68] sm:$0xff] %vm1019_vm5, %v975_v41  ;;  %1034 = vst.msk [vmem:[%s2733_s3 + $0x70] sm:$0xff] %vm1019_vm5, %v976_v56  ;;  %v982_v40 = vmax.f32 %v925_v53, %v2825_v29  ;;  %v928_v51 = vld [vmem:[%s2733_s3 + $0xb8] sm:$0xff]  ;;  %v983_v4 = vmax.f32 %v926_v38, %v2826_v16  ;;  %v984_v20 = vmax.f32 %v927_v45, %v2827_v63  ;;  %v929_v55 = vld [vmem:[%s2733_s3 + $0xc0] sm:$0xff]  ;;  %v2831_v31 = vmax.f32 %v1845_v3, 0.0 }
 0x186   : > { %1035 = vst.msk [vmem:[%s2733_s3 + $0x78] sm:$0xff] %vm1019_vm5, %v977_v9  ;;  %1036 = vst.msk [vmem:[%s2733_s3 + $0x80] sm:$0xff] %vm1019_vm5, %v978_v7  ;;  %v985_v54 = vmax.f32 %v928_v51, %v2828_v36  ;;  %v930_v8 = vld [vmem:[%s2733_s3 + $0xc8] sm:$0xff]  ;;  %v931_v23 = vld [vmem:[%s2733_s3 + $0xd0] sm:$0xff]  ;;  %v986_v34 = vmax.f32 %v929_v55, %v2829_v32  ;;  %v2833_v3 = vmax.f32 %v1857_v2, 0.0  ;;  %v2834_v9 = vmax.f32 %v1861_v19, 0.0 }
 0x187   : > { %1037 = vst.msk [vmem:[%s2733_s3 + $0x88] sm:$0xff] %vm1019_vm5, %v979_v28  ;;  %1038 = vst.msk [vmem:[%s2733_s3 + $0x90] sm:$0xff] %vm1019_vm5, %v980_v27  ;;  %v987_v41 = vmax.f32 %v930_v8, %v2830_v48  ;;  %v988_v56 = vmax.f32 %v931_v23, %v2831_v31  ;;  %v932_v61 = vld [vmem:[%s2733_s3 + $0xd8] sm:$0xff]  ;;  %v933_v6 = vld [vmem:[%s2733_s3 + $0xe0] sm:$0xff]  ;;  %v2835_v19 = vmax.f32 %v1640_v42, 0.0  ;;  %v2836_v2 = vmax.f32 %v1648_v49, 0.0 }
 0x188   : > { %1039 = vst.msk [vmem:[%s2733_s3 + $0x98] sm:$0xff] %vm1019_vm5, %v981_v22  ;;  %1040 = vst.msk [vmem:[%s2733_s3 + $0xa0] sm:$0xff] %vm1019_vm5, %v982_v40  ;;  %v934_v13 = vld [vmem:[%s2733_s3 + $0xe8] sm:$0xff]  ;;  %v989_v37 = vmax.f32 %v932_v61, %v2832_v35  ;;  %v990_v43 = vmax.f32 %v933_v6, %v2833_v3  ;;  %v935_v7 = vld [vmem:[%s2733_s3 + $0xf0] sm:$0xff]  ;;  %v2837_v60 = vmax.f32 %v1656_v58, 0.0  ;;  %v2838_v42 = vmax.f32 %v1664_v1, 0.0 }
 0x189   : > { %1041 = vst.msk [vmem:[%s2733_s3 + $0xa8] sm:$0xff] %vm1019_vm5, %v983_v4  ;;  %1042 = vst.msk [vmem:[%s2733_s3 + $0xb0] sm:$0xff] %vm1019_vm5, %v984_v20  ;;  %v991_v50 = vmax.f32 %v934_v13, %v2834_v9  ;;  %v936_v12 = vld [vmem:[%s2733_s3 + $0xf8] sm:$0xff]  ;;  %v937_v28 = vld [vmem:[%s2733_s3 + $0x100] sm:$0xff]  ;;  %v992_v52 = vmax.f32 %v935_v7, %v2835_v19  ;;  %v2839_v58 = vmax.f32 %v1672_v10, 0.0  ;;  %v2840_v29 = vmax.f32 %v1680_v17, 0.0 }
 0x18a   : > { %1043 = vst.msk [vmem:[%s2733_s3 + $0xb8] sm:$0xff] %vm1019_vm5, %v985_v54  ;;  %1044 = vst.msk [vmem:[%s2733_s3 + $0xc0] sm:$0xff] %vm1019_vm5, %v986_v34  ;;  %v993_v44 = vmax.f32 %v936_v12, %v2836_v2  ;;  %v994_v53 = vmax.f32 %v937_v28, %v2837_v60  ;;  %v938_v14 = vld [vmem:[%s2733_s3 + $0x108] sm:$0xff]  ;;  %v939_v27 = vld [vmem:[%s2733_s3 + $0x110] sm:$0xff]  ;;  %v2841_v1 = vmax.f32 %v1688_v26, 0.0  ;;  %v2842_v17 = vmax.f32 %v1696_v33, 0.0 }
 0x18b   : > { %1045 = vst.msk [vmem:[%s2733_s3 + $0xc8] sm:$0xff] %vm1019_vm5, %v987_v41  ;;  %1046 = vst.msk [vmem:[%s2733_s3 + $0xd0] sm:$0xff] %vm1019_vm5, %v988_v56  ;;  %v940_v5 = vld [vmem:[%s2733_s3 + $0x118] sm:$0xff]  ;;  %v995_v49 = vmax.f32 %v938_v14, %v2838_v42  ;;  %v996_v22 = vmax.f32 %v939_v27, %v2839_v58  ;;  %v941_v38 = vld [vmem:[%s2733_s3 + $0x120] sm:$0xff]  ;;  %v2843_v4 = vmax.f32 %v1704_v47, 0.0  ;;  %v2844_v26 = vmax.f32 %v1712_v62, 0.0 }
 0x18c   : > { %1047 = vst.msk [vmem:[%s2733_s3 + $0xd8] sm:$0xff] %vm1019_vm5, %v989_v37  ;;  %1048 = vst.msk [vmem:[%s2733_s3 + $0xe0] sm:$0xff] %vm1019_vm5, %v990_v43  ;;  %v997_v40 = vmax.f32 %v940_v5, %v2840_v29  ;;  %v942_v45 = vld [vmem:[%s2733_s3 + $0x128] sm:$0xff]  ;;  %v943_v51 = vld [vmem:[%s2733_s3 + $0x130] sm:$0xff]  ;;  %v998_v10 = vmax.f32 %v941_v38, %v2841_v1  ;;  %v2845_v47 = vmax.f32 %v1720_v15, 0.0  ;;  %v2846_v8 = vmax.f32 %v1728_v30, 0.0 }
 0x18d   : > { %1049 = vst.msk [vmem:[%s2733_s3 + $0xe8] sm:$0xff] %vm1019_vm5, %v991_v50  ;;  %1050 = vst.msk [vmem:[%s2733_s3 + $0xf0] sm:$0xff] %vm1019_vm5, %v992_v52  ;;  %v999_v16 = vmax.f32 %v942_v45, %v2842_v17  ;;  %v1000_v63 = vmax.f32 %v943_v51, %v2843_v4  ;;  %v944_v20 = vld [vmem:[%s2733_s3 + $0x138] sm:$0xff]  ;;  %v945_v36 = vld [vmem:[%s2733_s3 + $0x140] sm:$0xff]  ;;  %v2847_v62 = vmax.f32 %v1736_v57, 0.0  ;;  %v2848_v30 = vmax.f32 %v1744_v24, 0.0 }
 0x18e   : > { %1051 = vst.msk [vmem:[%s2733_s3 + $0xf8] sm:$0xff] %vm1019_vm5, %v993_v44  ;;  %1052 = vst.msk [vmem:[%s2733_s3 + $0x100] sm:$0xff] %vm1019_vm5, %v994_v53  ;;  %v946_v54 = vld [vmem:[%s2733_s3 + $0x148] sm:$0xff]  ;;  %v1001_v33 = vmax.f32 %v944_v20, %v2844_v26  ;;  %v1002_v55 = vmax.f32 %v945_v36, %v2845_v47  ;;  %v947_v32 = vld [vmem:[%s2733_s3 + $0x150] sm:$0xff]  ;;  %v2849_v31 = vmax.f32 %v1752_v11, 0.0  ;;  %v2850_v57 = vmax.f32 %v1760_v59, 0.0 }
 0x18f   : > { %1053 = vst.msk [vmem:[%s2733_s3 + $0x108] sm:$0xff] %vm1019_vm5, %v995_v49  ;;  %1054 = vst.msk [vmem:[%s2733_s3 + $0x110] sm:$0xff] %vm1019_vm5, %v996_v22  ;;  %v1003_v23 = vmax.f32 %v946_v54, %v2846_v8  ;;  %v948_v34 = vld [vmem:[%s2733_s3 + $0x158] sm:$0xff]  ;;  %v949_v48 = vld [vmem:[%s2733_s3 + $0x160] sm:$0xff]  ;;  %v1004_v15 = vmax.f32 %v947_v32, %v2847_v62  ;;  %v2851_v11 = vmax.f32 %v1768_v25, 0.0  ;;  %v2852_v37 = vmax.f32 %v1776_v0, 0.0 }
 0x190   : > { %1055 = vst.msk [vmem:[%s2733_s3 + $0x118] sm:$0xff] %vm1019_vm5, %v997_v40  ;;  %1056 = vst.msk [vmem:[%s2733_s3 + $0x120] sm:$0xff] %vm1019_vm5, %v998_v10  ;;  %v1005_v41 = vmax.f32 %v948_v34, %v2848_v30  ;;  %v1006_v56 = vmax.f32 %v949_v48, %v2849_v31  ;;  %v950_v61 = vld [vmem:[%s2733_s3 + $0x168] sm:$0xff]  ;;  %v951_v6 = vld [vmem:[%s2733_s3 + $0x170] sm:$0xff]  ;;  %v2853_v0 = vmax.f32 %v1784_v46, 0.0  ;;  %v2854_v25 = vmax.f32 %v1792_v18, 0.0 }
 0x191   : > { %1057 = vst.msk [vmem:[%s2733_s3 + $0x128] sm:$0xff] %vm1019_vm5, %v999_v16  ;;  %1058 = vst.msk [vmem:[%s2733_s3 + $0x130] sm:$0xff] %vm1019_vm5, %v1000_v63  ;;  %v952_v13 = vld [vmem:[%s2733_s3 + $0x178] sm:$0xff]  ;;  %v1007_v24 = vmax.f32 %v950_v61, %v2850_v57  ;;  %v1008_v35 = vmax.f32 %v951_v6, %v2851_v11  ;;  %v953_v43 = vld [vmem:[%s2733_s3 + $0x180] sm:$0xff]  ;;  %v2855_v12 = vmax.f32 %v1800_v39, 0.0  ;;  %v2856_v18 = vmax.f32 %v1808_v21, 0.0 }
 0x192   : > { %1059 = vst.msk [vmem:[%s2733_s3 + $0x138] sm:$0xff] %vm1019_vm5, %v1001_v33  ;;  %1060 = vst.msk [vmem:[%s2733_s3 + $0x140] sm:$0xff] %vm1019_vm5, %v1002_v55  ;;  %v1009_v3 = vmax.f32 %v952_v13, %v2852_v37  ;;  %v954_v9 = vld [vmem:[%s2733_s3 + $0x188] sm:$0xff]  ;;  %v955_v50 = vld [vmem:[%s2733_s3 + $0x190] sm:$0xff]  ;;  %v1010_v59 = vmax.f32 %v953_v43, %v2853_v0 }
 0x193   : > { %1061 = vst.msk [vmem:[%s2733_s3 + $0x148] sm:$0xff] %vm1019_vm5, %v1003_v23  ;;  %1062 = vst.msk [vmem:[%s2733_s3 + $0x150] sm:$0xff] %vm1019_vm5, %v1004_v15  ;;  %v1011_v7 = vmax.f32 %v954_v9, %v2854_v25  ;;  %v1012_v28 = vmax.f32 %v955_v50, %v2855_v12  ;;  %v956_v19 = vld [vmem:[%s2733_s3 + $0x198] sm:$0xff]  ;;  %v957_v52 = vld [vmem:[%s2733_s3 + $0x1a0] sm:$0xff] }
 0x194   : > { %1063 = vst.msk [vmem:[%s2733_s3 + $0x158] sm:$0xff] %vm1019_vm5, %v1005_v41  ;;  %1064 = vst.msk [vmem:[%s2733_s3 + $0x160] sm:$0xff] %vm1019_vm5, %v1006_v56  ;;  %v958_v2 = vld [vmem:[%s2733_s3 + $0x1a8] sm:$0xff]  ;;  %v1013_v46 = vmax.f32 %v956_v19, %v2856_v18  ;;  %v2857_v39 = vld [vmem:[#allocation2_spill] sm:$0xff] }
 0x195   : > { %1065 = vst.msk [vmem:[%s2733_s3 + $0x168] sm:$0xff] %vm1019_vm5, %v1007_v24  ;;  %1066 = vst.msk [vmem:[%s2733_s3 + $0x170] sm:$0xff] %vm1019_vm5, %v1008_v35  ;;  %v2858_v44 = vmax.f32 %v2857_v39, 0.0  ;;  %v2859_v53 = vld [vmem:[#allocation3_spill] sm:$0xff]  ;;  %v959_v5 = vld [vmem:[%s2733_s3 + $0x1b0] sm:$0xff] }
 0x196   : > { %1067 = vst.msk [vmem:[%s2733_s3 + $0x178] sm:$0xff] %vm1019_vm5, %v1009_v3  ;;  %v2860_v14 = vmax.f32 %v2859_v53, 0.0  ;;  %v960_v42 = vld [vmem:[%s2733_s3 + $0x1b8] sm:$0xff]  ;;  %v961_v49 = vld [vmem:[%s2733_s3 + $0x1c0] sm:$0xff]  ;;  %1068 = vst.msk [vmem:[%s2733_s3 + $0x180] sm:$0xff] %vm1019_vm5, %v1010_v59 }
 0x197   : > { %v1014_v60 = vmax.f32 %v957_v52, %v2858_v44  ;;  %1069 = vst.msk [vmem:[%s2733_s3 + $0x188] sm:$0xff] %vm1019_vm5, %v1011_v7  ;;  %1070 = vst.msk [vmem:[%s2733_s3 + $0x190] sm:$0xff] %vm1019_vm5, %v1012_v28  ;;  %v2861_v21 = vld [vmem:[#allocation4_spill] sm:$0xff]  ;;  %v2863_v29 = vld [vmem:[#allocation5_spill] sm:$0xff] }
 0x198   : > { %v1015_v27 = vmax.f32 %v958_v2, %v2860_v14  ;;  %v2862_v58 = vmax.f32 %v2861_v21, 0.0  ;;  %v2864_v40 = vmax.f32 %v2863_v29, 0.0  ;;  %v2865_v45 = vld [vmem:[#allocation6_spill] sm:$0xff]  ;;  %1071 = vst.msk [vmem:[%s2733_s3 + $0x198] sm:$0xff] %vm1019_vm5, %v1013_v46 }
 0x199   : > { %v2866_v51 = vmax.f32 %v2865_v45, 0.0  ;;  %1072 = vst.msk [vmem:[%s2733_s3 + $0x1a0] sm:$0xff] %vm1019_vm5, %v1014_v60 }
 0x19a   : > { %v1016_v22 = vmax.f32 %v959_v5, %v2862_v58  ;;  %v1017_v38 = vmax.f32 %v960_v42, %v2864_v40  ;;  %1073 = vst.msk [vmem:[%s2733_s3 + $0x1a8] sm:$0xff] %vm1019_vm5, %v1015_v27 }
 0x19b   : > { %v1018_v1 = vmax.f32 %v961_v49, %v2866_v51 }
 0x19c   : > { %1074 = vst.msk [vmem:[%s2733_s3 + $0x1b0] sm:$0xff] %vm1019_vm5, %v1016_v22  ;;  %1075 = vst.msk [vmem:[%s2733_s3 + $0x1b8] sm:$0xff] %vm1019_vm5, %v1017_v38 }
 0x19d   : > { %1076 = vst.msk [vmem:[%s2733_s3 + $0x1c0] sm:$0xff] %vm1019_vm5, %v1018_v1 }
 0x19e PF: > { %s13_s14 = sadd.s32 1, %s1453_s14   ;;  %s2867_s12 = smov %s1449_s13 }
 0x19f   : > { %p10_p7 = scmp.ge.s32.totalorder %s13_s14, 6   ;;  %s2868_s13 = smov %s2870_s15 }
 0x1a1   :  { %12 = sbr.rel (!%p10_p7) target bundleno = 2 (0x2), region = 70 }

// kernel: convnet_forward.4
= control target key start
LH: loop header
LB: loop body
LE: loop exit
PB: predicated region body
PF: predicated region fallthrough
CT: control target
= control target key end

     0   :  { %s684_s12 = smov 0   ;;  %s686_s13 = smov 0   ;;  %s849_s0 = inlined_call_operand.vmem [shape: bf16[4,72,108], index: 0, kind: input, shape index: {}]   ;;  %s850_s1 = inlined_call_operand.vmem [shape: bf16[108,32], index: 1, kind: input, shape index: {}]   ;;  %s851_s2 = inlined_call_operand.vmem [shape: f32[1,32], index: 2, kind: input, shape index: {}]   ;;  %s852_s3 = inlined_call_operand.vmem [shape: f32[72,32], index: 3, kind: output, shape index: {}]  }
   0x1   :  { %s688_s14 = smov 0  }
   0x2 LB: > { %s22_s15 = sadd.s32 1, %s656_s13  ;;  %p513_p0 = scmp.ge.s32.totalorder %s660_s14, 1  ;;  %s660_s14 = sphi %s688_s14, %s13_s14   ;;  %s656_s13 = sphi %s686_s13, %s854_s13   ;;  %s652_s12 = sphi %s684_s12, %s853_s12  }
   0x3   : > { %p23_p1 = scmp.ge.s32.totalorder %s22_s15, 4  ;;  %p156_p2 = scmp.lt.s32.totalorder %s660_s14, 5 }
   0x5   : > { %s856_s15 = smov (%p23_p1, %s22_s15), 0  ;;  %p157_p3 = pnand %p513_p0, %p156_p2 }
   0x6   : > { %v626_v0 = vld [vmem:[%s850_s1] sm:$0xff] (!%p157_p3)   ;;  %v662_v1 = vmov (!%p157_p3), 0.0   ;;  %v627_v2 = vld [vmem:[%s850_s1 + $0x8] sm:$0xff] (!%p157_p3)   ;;  %p185_p4 = scmp.lt.s32.totalorder (!%p157_p3), %s652_s12, 3  ;;  %vm663_vm0 = vmmov (!%p157_p3), 0   ;;  %v628_v3 = vld [vmem:[%s850_s1 + $0x10] sm:$0xff] (!%p157_p3)  }
   0x7   : > { %160 = sbr.rel (%p157_p3) target bundleno = 280 (0x118), region = 32  ;;  %551 = vmatprep.subr.bf16.mxu0 (!%p157_p3), %v662_v1  ;;  %585 = vmatprep.subr.bf16.mxu1 (!%p157_p3), %v662_v1  ;;  %v629_v4 = vld [vmem:[%s850_s1 + $0x18] sm:$0xff] (!%p157_p3)   ;;  %v630_v5 = vld [vmem:[%s850_s1 + $0x20] sm:$0xff] (!%p157_p3)   ;;  %v631_v6 = vld [vmem:[%s850_s1 + $0x28] sm:$0xff] (!%p157_p3)   ;;  %vm311_vm1 = vcmask (!%p157_p3), 1045504   ;;  %vm295_vm2 = vcmask (!%p157_p3), 883712  }
   0x8   : > { %552 = vmatpush3.bf16.msra.mxu0 (!%p157_p3), %v626_v0  ;;  %592 = vmatpush3.bf16.msra.mxu1 (!%p157_p3), %v626_v0  ;;  %v632_v7 = vld [vmem:[%s850_s1 + $0x30] sm:$0x3f] (!%p157_p3)   ;;  %v515_v14 = vld [vmem:[%s851_s2] ss:$0 sm:$0xff] (!%p157_p3)  ;;  %p533_p5 = scmp.ne.s32.totalorder (!%p157_p3), %s652_s12, 0 }
   0x9   : > { %553 = vmatprep.subr.bf16.mxu0 (!%p157_p3), %v662_v1  ;;  %586 = vmatprep.subr.bf16.mxu1 (!%p157_p3), %v662_v1  ;;  %v313_v8 = vsel (!%p157_p3), %vm311_vm1, %v632_v7, 0 }
   0xa   : > { %565 = vmatprep.mubr.msk.bf16.mxu0 (!%p157_p3), %vm663_vm0, %v662_v1  ;;  %577 = vmatprep.mubr.msk.bf16.mxu1 (!%p157_p3), %vm663_vm0, %v662_v1 }
   0xc   : > { %554 = vmatpush3.bf16.msra.mxu0 (!%p157_p3), %v627_v2  ;;  %593 = vmatpush3.bf16.msra.mxu1 (!%p157_p3), %v627_v2 }
   0xd   : > { %555 = vmatprep.subr.bf16.mxu0 (!%p157_p3), %v662_v1  ;;  %587 = vmatprep.subr.bf16.mxu1 (!%p157_p3), %v662_v1 }
   0xe   : > { %s186_s20 = scalar_select %p185_p4, %s652_s12, 3 }
   0xf   : > { %vm400_vm3 = vcmask (!%p533_p5), 261120  }
  0x10   : > { %s599_s23 = smul.u32 36, %s186_s20  ;;  %556 = vmatpush3.bf16.msra.mxu0 %v628_v3  ;;  %594 = vmatpush3.bf16.msra.mxu1 %v628_v3 }
  0x11   : > { %557 = vmatprep.subr.bf16.mxu0 %v662_v1  ;;  %588 = vmatprep.subr.bf16.mxu1 %v662_v1 }
  0x12   : > { %s720_s26 = scalar_lea.vmem %s849_s0, %s599_s23 }
  0x13   : > { %v633_v9 = vld [vmem:[%s720_s26] sm:$0xff]   ;;  %v634_v10 = vld [vmem:[%s720_s26 + $0x18] sm:$0xff]   ;;  %v635_v11 = vld [vmem:[%s720_s26 + $0x8] sm:$0xff]  }
  0x14   : > { %558 = vmatpush3.bf16.msra.mxu0 %v629_v4  ;;  %595 = vmatpush3.bf16.msra.mxu1 %v629_v4  ;;  %v636_v12 = vld [vmem:[%s720_s26 + $0x20] ss:$0 sps:$4 sm:$0xff]   ;;  %v637_v13 = vld [vmem:[%s720_s26 + $0x10] sm:$0xff]  }
  0x15   : > { %559 = vmatprep.subr.bf16.mxu0 %v662_v1  ;;  %589 = vmatprep.subr.bf16.mxu1 %v662_v1 }
  0x18   : > { %560 = vmatpush3.bf16.msra.mxu0 %v630_v5  ;;  %596 = vmatpush3.bf16.msra.mxu1 %v630_v5 }
  0x19   : > { %561 = vmatprep.subr.bf16.mxu0 %v662_v1  ;;  %590 = vmatprep.subr.bf16.mxu1 %v662_v1 }
  0x1c   : > { %562 = vmatpush3.bf16.msra.mxu0 %v631_v6  ;;  %597 = vmatpush3.bf16.msra.mxu1 %v631_v6 }
  0x1d   : > { %563 = vmatprep.subr.bf16.mxu0 %v662_v1  ;;  %591 = vmatprep.subr.bf16.mxu1 %v662_v1 }
  0x20   : > { %564 = vmatpush3.bf16.msra.mxu0 %v313_v8  ;;  %598 = vmatpush3.bf16.msra.mxu1 %v313_v8 }
  0x23   : > { %566 = vmatmul.mubr.msk.bf16.vlgmr.msra.gmra.mrb[0].mxu0 %vm295_vm2, %v633_v9  ;;  %578 = vmatmul.mubr.msk.bf16.vlgmr.msra.gmra.mrb[0].mxu1 %vm295_vm2, %v634_v10 }
  0x24   : > { %569 = vmatprep.mubr.msk.bf16.mxu0 %vm663_vm0, %v662_v1  ;;  %581 = vmatprep.mubr.msk.bf16.mxu1 %vm663_vm0, %v662_v1 }
  0x2b   : > { %570 = vmatmul.mubr.msk.bf16.gmra.mrb[4].mxu0 %vm295_vm2, %v635_v11  ;;  %582 = vmatmul.mubr.msk.bf16.gmra.mrb[4].mxu1 %vm295_vm2, %v636_v12 }
  0x2c   : > { %573 = vmatprep.mubr.msk.bf16.mxu0 %vm663_vm0, %v662_v1 }
  0x33   : > { %574 = vmatmul.mubr.msk.bf16.gmra.mrb[8].mxu0 %vm295_vm2, %v637_v13 }
  0xf6   : > { %v349_v15 = vpop.f32.mrb[0].mxu0  ;;  %v373_v16 = vpop.f32.mrb[0].mxu1 }
  0xf7   : > { %v350_v17 = vadd.f32 %v515_v14, %v349_v15  ;;  %v567_v18 = vpop.f32.mrb[1].mxu0  ;;  %v745_v19 = vadd.f32 %v515_v14, %v373_v16  ;;  %v579_v20 = vpop.f32.mrb[1].mxu1 }
  0xf8   : > { %v352_v21 = vpop.f32.mrb[2].mxu0  ;;  %v376_v22 = vpop.f32.mrb[2].mxu1 }
  0xf9   : > { %v387_v23 = vmax.f32 %v350_v17, 0.0  ;;  %v353_v24 = vadd.f32 %v515_v14, %v352_v21  ;;  %v568_v25 = vpop.f32.mrb[3].mxu0  ;;  %v393_v26 = vmax.f32 %v745_v19, 0.0  ;;  %v377_v27 = vadd.f32 %v515_v14, %v376_v22  ;;  %v580_v28 = vpop.f32.mrb[3].mxu1 }
  0xfb   : > { %v388_v29 = vmax.f32 %v353_v24, 0.0  ;;  %v394_v30 = vmax.f32 %v377_v27, 0.0  ;;  %401 = vst.msk [vmem:[%s852_s3] sm:$0xff] (!%p533_p5), %vm400_vm3, %v387_v23  ;;  %407 = vst.msk [vmem:[%s852_s3 + $0x30] sm:$0xff] (!%p533_p5), %vm400_vm3, %v393_v26 }
  0xfd   : > { %402 = vst.msk [vmem:[%s852_s3 + $0x8] sm:$0xff] (!%p533_p5), %vm400_vm3, %v388_v29  ;;  %408 = vst.msk [vmem:[%s852_s3 + $0x38] sm:$0xff] (!%p533_p5), %vm400_vm3, %v394_v30 }
  0xfe   : > { %v357_v31 = vpop.f32.mrb[4].mxu0  ;;  %v381_v32 = vpop.f32.mrb[4].mxu1 }
  0xff   : > { %v358_v33 = vadd.f32 %v515_v14, %v357_v31  ;;  %v571_v34 = vpop.f32.mrb[5].mxu0  ;;  %v382_v35 = vadd.f32 %v515_v14, %v381_v32  ;;  %v583_v36 = vpop.f32.mrb[5].mxu1 }
 0x100   : > { %v360_v37 = vpop.f32.mrb[6].mxu0  ;;  %v384_v38 = vpop.f32.mrb[6].mxu1 }
 0x101   : > { %v389_v39 = vmax.f32 %v358_v33, 0.0  ;;  %v361_v40 = vadd.f32 %v515_v14, %v360_v37  ;;  %v572_v41 = vpop.f32.mrb[7].mxu0  ;;  %v395_v42 = vmax.f32 %v382_v35, 0.0  ;;  %v584_v43 = vpop.f32.mrb[7].mxu1 }
 0x103   : > { %v390_v44 = vmax.f32 %v361_v40, 0.0  ;;  %403 = vst.msk [vmem:[%s852_s3 + $0x10] sm:$0xff] (!%p533_p5), %vm400_vm3, %v389_v39  ;;  %409 = vst.msk [vmem:[%s852_s3 + $0x40] sm:$0xff] (!%p533_p5), %vm400_vm3, %v395_v42 }
 0x105   : > { %399 = sbr.rel (%p533_p5) target bundleno = 270 (0x10e), region = 36  ;;  %404 = vst.msk [vmem:[%s852_s3 + $0x18] sm:$0xff] (!%p533_p5), %vm400_vm3, %v390_v44 }
 0x106   : > { %v365_v45 = vpop.f32.mrb[8].mxu0 }
 0x107   : > { %v366_v46 = vadd.f32 %v515_v14, %v365_v45  ;;  %v575_v47 = vpop.f32.mrb[9].mxu0 }
 0x108   : > { %v368_v48 = vpop.f32.mrb[10].mxu0 }
 0x109   : > { %v391_v49 = vmax.f32 %v366_v46, 0.0  ;;  %v369_v50 = vadd.f32 %v515_v14, %v368_v48  ;;  %v576_v51 = vpop.f32.mrb[11].mxu0 }
 0x10b   : > { %v392_v52 = vmax.f32 %v369_v50, 0.0  ;;  %405 = vst.msk [vmem:[%s852_s3 + $0x20] sm:$0xff] (!%p533_p5), %vm400_vm3, %v391_v49 }
 0x10d   : > { %406 = vst.msk [vmem:[%s852_s3 + $0x28] sm:$0xff] %vm400_vm3, %v392_v52 }
 0x10e PF: > { %p534_p6 = scmp.le.s32.totalorder %s652_s12, 0 }
 0x10f   : > { %v414_v53 = vld [vmem:[%s852_s3] sm:$0xff] (!%p534_p6)  ;;  %vm432_vm4 = vcmask (!%p534_p6), 261120   ;;  %v415_v54 = vld [vmem:[%s852_s3 + $0x8] sm:$0xff] (!%p534_p6)  ;;  %v416_v55 = vld [vmem:[%s852_s3 + $0x10] sm:$0xff] (!%p534_p6) }
 0x110   : > { %413 = sbr.rel (%p534_p6) target bundleno = 280 (0x118), region = 40  ;;  %v423_v56 = vmax.f32 (!%p534_p6), %v414_v53, %v387_v23  ;;  %v424_v57 = vmax.f32 (!%p534_p6), %v415_v54, %v388_v29  ;;  %v425_v58 = vmax.f32 (!%p534_p6), %v416_v55, %v389_v39  ;;  %v417_v59 = vld [vmem:[%s852_s3 + $0x18] sm:$0xff] (!%p534_p6)  ;;  %v420_v1 = vld [vmem:[%s852_s3 + $0x30] sm:$0xff] (!%p534_p6)  ;;  %v422_v3 = vld [vmem:[%s852_s3 + $0x40] sm:$0xff] (!%p534_p6) }
 0x111   : > { %v426_v62 = vmax.f32 (!%p534_p6), %v417_v59, %v390_v44  ;;  %v421_v2 = vld [vmem:[%s852_s3 + $0x38] sm:$0xff] (!%p534_p6)  ;;  %v429_v4 = vmax.f32 (!%p534_p6), %v420_v1, %v393_v26  ;;  %v431_v6 = vmax.f32 (!%p534_p6), %v422_v3, %v395_v42 }
 0x112   : > { %433 = vst.msk [vmem:[%s852_s3] sm:$0xff] (!%p534_p6), %vm432_vm4, %v423_v56  ;;  %434 = vst.msk [vmem:[%s852_s3 + $0x8] sm:$0xff] (!%p534_p6), %vm432_vm4, %v424_v57  ;;  %v430_v5 = vmax.f32 (!%p534_p6), %v421_v2, %v394_v30 }
 0x113   : > { %435 = vst.msk [vmem:[%s852_s3 + $0x10] sm:$0xff] (!%p534_p6), %vm432_vm4, %v425_v58  ;;  %436 = vst.msk [vmem:[%s852_s3 + $0x18] sm:$0xff] (!%p534_p6), %vm432_vm4, %v426_v62 }
 0x114   : > { %v418_v60 = vld [vmem:[%s852_s3 + $0x20] sm:$0xff] (!%p534_p6)  ;;  %v419_v61 = vld [vmem:[%s852_s3 + $0x28] sm:$0xff] (!%p534_p6)  ;;  %439 = vst.msk [vmem:[%s852_s3 + $0x30] sm:$0xff] (!%p534_p6), %vm432_vm4, %v429_v4  ;;  %440 = vst.msk [vmem:[%s852_s3 + $0x38] sm:$0xff] (!%p534_p6), %vm432_vm4, %v430_v5 }
 0x115   : > { %v427_v63 = vmax.f32 (!%p534_p6), %v418_v60, %v391_v49  ;;  %v428_v0 = vmax.f32 (!%p534_p6), %v419_v61, %v392_v52  ;;  %441 = vst.msk [vmem:[%s852_s3 + $0x40] sm:$0xff] (!%p534_p6), %vm432_vm4, %v431_v6 }
 0x117   : > { %437 = vst.msk [vmem:[%s852_s3 + $0x20] sm:$0xff] %vm432_vm4, %v427_v63  ;;  %438 = vst.msk [vmem:[%s852_s3 + $0x28] sm:$0xff] %vm432_vm4, %v428_v0 }
 0x118 PF: > { %s13_s14 = sadd.s32 1, %s660_s14   ;;  %s853_s12 = smov %s656_s13 }
 0x119   : > { %p10_p7 = scmp.ge.s32.totalorder %s13_s14, 6   ;;  %s854_s13 = smov %s856_s15 }
 0x11b   :  { %12 = sbr.rel (!%p10_p7) target bundleno = 2 (0x2), region = 70 }

// kernel: convnet_forward.5
= control target key start
LH: loop header
LB: loop body
LE: loop exit
PB: predicated region body
PF: predicated region fallthrough
CT: control target
= control target key end

     0   :  { %vm1438_vm0 = vmmov 0   ;;  %vm920_vm1 = vcmask 1043456   ;;  %vm916_vm2 = vcmask 982016   ;;  %vm1021_vm3 = vcmask 1041408   ;;  %s1792_s1 = inlined_call_operand.vmem [shape: bf16[1152,120], index: 1, kind: input, shape index: {}]   ;;  %s1793_s0 = inlined_call_operand.vmem [shape: bf16[8,1152], index: 0, kind: input, shape index: {}]   ;;  %s1794_s3 = inlined_call_operand.vmem [shape: bf16[120,84], index: 3, kind: input, shape index: {}]   ;;  %s1795_s5 = inlined_call_operand.vmem [shape: bf16[84,10], index: 5, kind: input, shape index: {}]   ;;  %s1796_s2 = inlined_call_operand.vmem [shape: f32[1,120], index: 2, kind: input, shape index: {}]   ;;  %s1797_s4 = inlined_call_operand.vmem [shape: f32[1,84], index: 4, kind: input, shape index: {}]   ;;  %s1798_s6 = inlined_call_operand.vmem [shape: f32[1,10], index: 6, kind: input, shape index: {}]   ;;  %s1799_s7 = inlined_call_operand.vmem [shape: f32[8,10], index: 7, kind: output, shape index: {}]  }
   0x1   :  { %v1342_v0 = vld [vmem:[%s1792_s1 + $0x40] sm:$0xff]   ;;  %v1346_v4 = vld [vmem:[%s1792_s1 + $0x48] sm:$0xff]   ;;  %v1350_v8 = vld [vmem:[%s1792_s1 + $0x50] sm:$0xff]   ;;  %vm1017_vm4 = vcmask 687104   ;;  %vm1065_vm5 = vcmask 80896  }
   0x2   :  { %v1343_v1 = vld [vmem:[%s1792_s1] sm:$0xff]   ;;  %1171 = vmatprep.subr.bf16.mxu0 %v1342_v0  ;;  %v1347_v5 = vld [vmem:[%s1792_s1 + $0x8] sm:$0xff]   ;;  %v1351_v9 = vld [vmem:[%s1792_s1 + $0x10] sm:$0xff]  }
   0x3   :  { %v1344_v2 = vld [vmem:[%s1792_s1 + $0xc0] sm:$0xff]   ;;  %1172 = vmatpush3.bf16.msra.mxu0 %v1343_v1  ;;  %v1348_v6 = vld [vmem:[%s1792_s1 + $0xc8] sm:$0xff]   ;;  %v1352_v10 = vld [vmem:[%s1792_s1 + $0xd0] sm:$0xff]  }
   0x4   :  { %v1345_v3 = vld [vmem:[%s1792_s1 + $0x80] sm:$0xff]   ;;  %1193 = vmatprep.subr.bf16.mxu1 %v1344_v2  ;;  %1173 = vmatprep.subr.bf16.mxu0 %v1346_v4  ;;  %v1349_v7 = vld [vmem:[%s1792_s1 + $0x88] sm:$0xff]   ;;  %v1353_v11 = vld [vmem:[%s1792_s1 + $0x90] sm:$0xff]  }
   0x5   :  { %1194 = vmatpush3.bf16.msra.mxu1 %v1345_v3  ;;  %v1354_v12 = vld [vmem:[%s1792_s1 + $0x58] sm:$0xff]   ;;  %v1358_v16 = vld [vmem:[%s1792_s1 + $0x60] sm:$0xff]   ;;  %v1362_v20 = vld [vmem:[%s1792_s1 + $0x68] sm:$0xff]  }
   0x6   :  { %1195 = vmatprep.subr.bf16.mxu1 %v1348_v6  ;;  %v1355_v13 = vld [vmem:[%s1792_s1 + $0x18] sm:$0xff]   ;;  %v1359_v17 = vld [vmem:[%s1792_s1 + $0x20] sm:$0xff]   ;;  %v1363_v21 = vld [vmem:[%s1792_s1 + $0x28] sm:$0xff]  }
   0x7   :  { %1174 = vmatpush3.bf16.msra.mxu0 %v1347_v5  ;;  %v1356_v14 = vld [vmem:[%s1792_s1 + $0xd8] sm:$0xff]   ;;  %v1360_v18 = vld [vmem:[%s1792_s1 + $0xe0] sm:$0xff]   ;;  %v1364_v22 = vld [vmem:[%s1792_s1 + $0xe8] sm:$0xff]  }
   0x8   :  { %1175 = vmatprep.subr.bf16.mxu0 %v1350_v8  ;;  %v1357_v15 = vld [vmem:[%s1792_s1 + $0x98] sm:$0xff]   ;;  %v1361_v19 = vld [vmem:[%s1792_s1 + $0xa0] sm:$0xff]   ;;  %v1365_v23 = vld [vmem:[%s1792_s1 + $0xa8] sm:$0xff]  }
   0x9   :  { %1196 = vmatpush3.bf16.msra.mxu1 %v1349_v7  ;;  %v1366_v24 = vld [vmem:[%s1792_s1 + $0x70] sm:$0xff]   ;;  %v1370_v28 = vld [vmem:[%s1792_s1 + $0x78] sm:$0xff]   ;;  %v27_v31 = vld [vmem:[%s1793_s0] sm:$0xff] }
   0xa   :  { %1197 = vmatprep.subr.bf16.mxu1 %v1352_v10  ;;  %v1367_v25 = vld [vmem:[%s1792_s1 + $0x30] sm:$0xff]   ;;  %v1371_v29 = vld [vmem:[%s1792_s1 + $0x38] sm:$0xff]   ;;  %v1072_v32 = vcombine.low %v27_v31, %v27_v31  ;;  %v1073_v33 = vcombine.high %v27_v31, %v27_v31  ;;  %v1376_v35 = vld [vmem:[%s1792_s1 + $0x140] sm:$0xff]  }
   0xb   :  { %1176 = vmatpush3.bf16.msra.mxu0 %v1351_v9  ;;  %v1368_v26 = vld [vmem:[%s1792_s1 + $0xf0] sm:$0xff]   ;;  %v1372_v30 = vld [vmem:[%s1792_s1 + $0xf8] sm:$0xff]   ;;  %v28_v36 = vld [vmem:[%s1793_s0 + $0x8] sm:$0xff]  ;;  %v1437_v9 = vmov 0.0  }
   0xc   :  { %1177 = vmatprep.subr.bf16.mxu0 %v1354_v12  ;;  %v1369_v27 = vld [vmem:[%s1792_s1 + $0xb0] sm:$0xff]   ;;  %v1375_v34 = vld [vmem:[%s1792_s1 + $0xb8] sm:$0xff]   ;;  %679 = vmatprep.mubr.bf16.mxu0 %v1073_v33  ;;  %v1074_v37 = vcombine.low %v28_v36, %v28_v36  ;;  %v1075_v38 = vcombine.high %v28_v36, %v28_v36  ;;  %v1379_v39 = vld [vmem:[%s1792_s1 + $0x100] sm:$0xff]  }
   0xd   :  { %1198 = vmatpush3.bf16.msra.mxu1 %v1353_v11  ;;  %v1380_v40 = vld [vmem:[%s1792_s1 + $0x1c0] sm:$0xff]   ;;  %v1382_v42 = vld [vmem:[%s1792_s1 + $0x148] sm:$0xff]   ;;  %v1386_v46 = vld [vmem:[%s1792_s1 + $0x150] sm:$0xff]  }
   0xe   :  { %1199 = vmatprep.subr.bf16.mxu1 %v1356_v14  ;;  %719 = vmatprep.mubr.bf16.mxu1 %v1075_v38  ;;  %v1381_v41 = vld [vmem:[%s1792_s1 + $0x180] sm:$0xff]   ;;  %v1383_v43 = vld [vmem:[%s1792_s1 + $0x108] sm:$0xff]   ;;  %v1387_v47 = vld [vmem:[%s1792_s1 + $0x110] sm:$0xff]  }
   0xf   :  { %1178 = vmatpush3.bf16.msra.mxu0 %v1355_v13  ;;  %v1384_v44 = vld [vmem:[%s1792_s1 + $0x1c8] sm:$0xff]   ;;  %v1388_v48 = vld [vmem:[%s1792_s1 + $0x1d0] sm:$0xff]   ;;  %v1390_v50 = vld [vmem:[%s1792_s1 + $0x158] sm:$0xff]  }
  0x10   :  { %1179 = vmatprep.subr.bf16.mxu0 %v1358_v16  ;;  %v1385_v45 = vld [vmem:[%s1792_s1 + $0x188] sm:$0xff]   ;;  %v1389_v49 = vld [vmem:[%s1792_s1 + $0x190] sm:$0xff]   ;;  %v1391_v51 = vld [vmem:[%s1792_s1 + $0x118] sm:$0xff]  }
  0x11   :  { %1200 = vmatpush3.bf16.msra.mxu1 %v1357_v15  ;;  %v1392_v52 = vld [vmem:[%s1792_s1 + $0x1d8] sm:$0xff]   ;;  %v1394_v54 = vld [vmem:[%s1792_s1 + $0x160] sm:$0xff]   ;;  %v1398_v58 = vld [vmem:[%s1792_s1 + $0x168] sm:$0xff]  }
  0x12   :  { %1201 = vmatprep.subr.bf16.mxu1 %v1360_v18  ;;  %v1393_v53 = vld [vmem:[%s1792_s1 + $0x198] sm:$0xff]   ;;  %v1395_v55 = vld [vmem:[%s1792_s1 + $0x120] sm:$0xff]   ;;  %v1399_v59 = vld [vmem:[%s1792_s1 + $0x128] sm:$0xff]  }
  0x13   :  { %1180 = vmatpush3.bf16.msra.mxu0 %v1359_v17  ;;  %v1396_v56 = vld [vmem:[%s1792_s1 + $0x1e0] sm:$0xff]   ;;  %v1400_v60 = vld [vmem:[%s1792_s1 + $0x1e8] sm:$0xff]   ;;  %v1402_v62 = vld [vmem:[%s1792_s1 + $0x170] sm:$0xff]  }
  0x14   :  { %1181 = vmatprep.subr.bf16.mxu0 %v1362_v20  ;;  %v1397_v57 = vld [vmem:[%s1792_s1 + $0x1a0] sm:$0xff]   ;;  %v1401_v61 = vld [vmem:[%s1792_s1 + $0x1a8] sm:$0xff]   ;;  %v1403_v63 = vld [vmem:[%s1792_s1 + $0x130] sm:$0xff]  }
  0x15   :  { %1202 = vmatpush3.bf16.msra.mxu1 %v1361_v19  ;;  %v1404_v0 = vld [vmem:[%s1792_s1 + $0x1f0] sm:$0xff]   ;;  %v1406_v2 = vld [vmem:[%s1792_s1 + $0x178] sm:$0xff]   ;;  %v1414_v13 = vld [vmem:[%s1792_s1 + $0x200] sm:$0xff]  }
  0x16   :  { %1203 = vmatprep.subr.bf16.mxu1 %v1364_v22  ;;  %v1405_v1 = vld [vmem:[%s1792_s1 + $0x1b0] sm:$0xff]   ;;  %v1407_v3 = vld [vmem:[%s1792_s1 + $0x138] sm:$0xff]   ;;  %v1415_v14 = vld [vmem:[%s1792_s1 + $0x208] sm:$0xff]  }
  0x17   :  { %1182 = vmatpush3.bf16.msra.mxu0 %v1363_v21  ;;  %v1408_v4 = vld [vmem:[%s1792_s1 + $0x1f8] sm:$0xff]   ;;  %v29_v5 = vld [vmem:[%s1793_s0 + $0x10] sm:$0xff]  ;;  %v1418_v17 = vld [vmem:[%s1792_s1 + $0x220] sm:$0xff]  }
  0x18   :  { %1183 = vmatprep.subr.bf16.mxu0 %v1366_v24  ;;  %v1076_v6 = vcombine.low %v29_v5, %v29_v5  ;;  %v1077_v7 = vcombine.high %v29_v5, %v29_v5  ;;  %v1411_v8 = vld [vmem:[%s1792_s1 + $0x1b8] sm:$0xff]   ;;  %v1416_v15 = vld [vmem:[%s1792_s1 + $0x210] sm:$0xff]   ;;  %v1419_v18 = vld [vmem:[%s1792_s1 + $0x228] sm:$0xff]  }
  0x19   :  { %1204 = vmatpush3.bf16.msra.mxu1 %v1365_v23  ;;  %v30_v10 = vld [vmem:[%s1793_s0 + $0x18] sm:$0xff]  ;;  %v1420_v19 = vld [vmem:[%s1792_s1 + $0x230] sm:$0xff]   ;;  %v1422_v21 = vld [vmem:[%s1793_s0 + $0x20] ss:$0 sps:$4 sm:$0xff]  }
  0x1a   :  { %1205 = vmatprep.subr.bf16.mxu1 %v1368_v26  ;;  %v1078_v11 = vcombine.low %v30_v10, %v30_v10  ;;  %v1079_v12 = vcombine.high %v30_v10, %v30_v10  ;;  %v1417_v16 = vld [vmem:[%s1792_s1 + $0x218] sm:$0xff]   ;;  %v1423_v22 = vld [vmem:[%s1794_s3] sm:$0xff]   ;;  %v1424_v23 = vld [vmem:[%s1794_s3 + $0x8] sm:$0xff]  }
  0x1b   :  { %1184 = vmatpush3.bf16.msra.mxu0 %v1367_v25  ;;  %v1421_v20 = vld [vmem:[%s1792_s1 + $0x238] sm:$0xff]   ;;  %v1425_v24 = vld [vmem:[%s1794_s3 + $0x10] sm:$0xff]   ;;  %v1427_v26 = vld [vmem:[%s1794_s3 + $0x20] sm:$0xff]  }
  0x1c   :  { %1185 = vmatprep.subr.bf16.mxu0 %v1370_v28  ;;  %v1426_v25 = vld [vmem:[%s1794_s3 + $0x18] sm:$0xff]   ;;  %v1429_v28 = vld [vmem:[%s1794_s3 + $0x30] sm:$0xff]   ;;  %v1431_v31 = vld [vmem:[%s1795_s5] sm:$0xff]  }
  0x1d   :  { %1206 = vmatpush3.bf16.msra.mxu1 %v1369_v27  ;;  %v1428_v27 = vld [vmem:[%s1794_s3 + $0x28] sm:$0xff]   ;;  %v1433_v33 = vld [vmem:[%s1795_s5 + $0x10] sm:$0xff]   ;;  %v1071_v36 = vld [vmem:[%s1796_s2] ss:$0 sm:$0xff] }
  0x1e   :  { %1207 = vmatprep.subr.bf16.mxu1 %v1372_v30 }
  0x1f   :  { %1186 = vmatpush3.bf16.msra.mxu0 %v1371_v29  ;;  %v1430_v29 = vld [vmem:[%s1794_s3 + $0x38] ss:$0 sps:$4 sm:$0xff]  }
  0x20   :  { %1215 = vmatprep.subr.bf16.mxu0 %v1376_v35  ;;  %v922_v30 = vsel %vm920_vm1, %v1430_v29, 0 }
  0x21   :  { %1208 = vmatpush3.bf16.msra.mxu1 %v1375_v34  ;;  %v1434_v34 = vld [vmem:[%s1795_s5 + $0x18] sm:$0xff]  }
  0x22   :  { %680 = vmatmul.mubr.bf16.vlgmr.msra.gmra.mrb[0].mxu0 %v1072_v32  ;;  %1237 = vmatprep.subr.bf16.mxu1 %v1380_v40  ;;  %v1432_v32 = vld [vmem:[%s1795_s5 + $0x8] sm:$0xff]  }
  0x23   :  { %1216 = vmatpush3.bf16.msra.mxu0 %v1379_v39  ;;  %759 = vmatprep.mubr.bf16.mxu0 %v1077_v7 }
  0x24   :  { %720 = vmatmul.mubr.bf16.vlgmr.msra.gmra.mrb[0].mxu1 %v1074_v37  ;;  %1217 = vmatprep.subr.bf16.mxu0 %v1382_v42 }
  0x25   :  { %1238 = vmatpush3.bf16.msra.mxu1 %v1381_v41  ;;  %799 = vmatprep.mubr.bf16.mxu1 %v1079_v12 }
  0x26   :  { %1239 = vmatprep.subr.bf16.mxu1 %v1384_v44 }
  0x27   :  { %1218 = vmatpush3.bf16.msra.mxu0 %v1383_v43 }
  0x28   :  { %1219 = vmatprep.subr.bf16.mxu0 %v1386_v46 }
  0x29   :  { %1240 = vmatpush3.bf16.msra.mxu1 %v1385_v45 }
  0x2a   :  { %1241 = vmatprep.subr.bf16.mxu1 %v1388_v48 }
  0x2b   :  { %1220 = vmatpush3.bf16.msra.mxu0 %v1387_v47 }
  0x2c   :  { %1221 = vmatprep.subr.bf16.mxu0 %v1390_v50 }
  0x2d   :  { %1242 = vmatpush3.bf16.msra.mxu1 %v1389_v49 }
  0x2e   :  { %1243 = vmatprep.subr.bf16.mxu1 %v1392_v52 }
  0x2f   :  { %1222 = vmatpush3.bf16.msra.mxu0 %v1391_v51 }
  0x30   :  { %1223 = vmatprep.subr.bf16.mxu0 %v1394_v54 }
  0x31   :  { %1244 = vmatpush3.bf16.msra.mxu1 %v1393_v53 }
  0x32   :  { %1245 = vmatprep.subr.bf16.mxu1 %v1396_v56 }
  0x33   :  { %1224 = vmatpush3.bf16.msra.mxu0 %v1395_v55 }
  0x34   :  { %1225 = vmatprep.subr.bf16.mxu0 %v1398_v58 }
  0x35   :  { %1246 = vmatpush3.bf16.msra.mxu1 %v1397_v57 }
  0x36   :  { %1247 = vmatprep.subr.bf16.mxu1 %v1400_v60 }
  0x37   :  { %1226 = vmatpush3.bf16.msra.mxu0 %v1399_v59 }
  0x38   :  { %1227 = vmatprep.subr.bf16.mxu0 %v1402_v62 }
  0x39   :  { %1248 = vmatpush3.bf16.msra.mxu1 %v1401_v61 }
  0x3a   :  { %1249 = vmatprep.subr.bf16.mxu1 %v1404_v0 }
  0x3b   :  { %1228 = vmatpush3.bf16.msra.mxu0 %v1403_v63 }
  0x3c   :  { %1229 = vmatprep.subr.bf16.mxu0 %v1406_v2 }
  0x3d   :  { %1250 = vmatpush3.bf16.msra.mxu1 %v1405_v1 }
  0x3e   :  { %1251 = vmatprep.subr.bf16.mxu1 %v1408_v4  ;;  %v1436_v4 = vld [vmem:[%s1795_s5 + $0x28] ss:$0 sps:$4 sm:$0x33]  }
  0x3f   :  { %1230 = vmatpush3.bf16.msra.mxu0 %v1407_v3  ;;  %v1435_v3 = vld [vmem:[%s1795_s5 + $0x20] sm:$0xff]   ;;  %v1023_v5 = vsel %vm1021_vm3, %v1436_v4, 0 }
  0x40   :  { %1284 = vmatprep.subr.bf16.mxu0 %v1437_v9 }
  0x41   :  { %1252 = vmatpush3.bf16.msra.mxu1 %v1411_v8 }
  0x42   :  { %760 = vmatmul.mubr.bf16.vlgmr.msra.gmra.mrb[4].mxu0 %v1076_v6  ;;  %1304 = vmatprep.subr.bf16.mxu1 %v1437_v9  ;;  %v1153_v6 = vld [vmem:[%s1797_s4] ss:$0 sm:$0xff] }
  0x43   :  { %1285 = vmatpush3.bf16.msra.mxu0 %v1414_v13  ;;  %1300 = vmatprep.mubr.msk.bf16.mxu0 %vm1438_vm0, %v1437_v9 }
  0x44   :  { %800 = vmatmul.mubr.bf16.vlgmr.msra.gmra.mrb[4].mxu1 %v1078_v11  ;;  %1286 = vmatprep.subr.bf16.mxu0 %v1437_v9 }
  0x45   :  { %1320 = vmatprep.mubr.msk.bf16.mxu1 %vm1438_vm0, %v1437_v9  ;;  %1305 = vmatpush3.bf16.msra.mxu1 %v1423_v22 }
  0x46   :  { %1306 = vmatprep.subr.bf16.mxu1 %v1437_v9 }
  0x47   :  { %1287 = vmatpush3.bf16.msra.mxu0 %v1415_v14 }
  0x48   :  { %1288 = vmatprep.subr.bf16.mxu0 %v1437_v9 }
  0x49   :  { %1307 = vmatpush3.bf16.msra.mxu1 %v1424_v23 }
  0x4a   :  { %1308 = vmatprep.subr.bf16.mxu1 %v1437_v9 }
  0x4b   :  { %1289 = vmatpush3.bf16.msra.mxu0 %v1416_v15 }
  0x4c   :  { %1290 = vmatprep.subr.bf16.mxu0 %v1437_v9 }
  0x4d   :  { %1309 = vmatpush3.bf16.msra.mxu1 %v1425_v24 }
  0x4e   :  { %1310 = vmatprep.subr.bf16.mxu1 %v1437_v9 }
  0x4f   :  { %1291 = vmatpush3.bf16.msra.mxu0 %v1417_v16 }
  0x50   :  { %1292 = vmatprep.subr.bf16.mxu0 %v1437_v9 }
  0x51   :  { %1311 = vmatpush3.bf16.msra.mxu1 %v1426_v25 }
  0x52   :  { %1312 = vmatprep.subr.bf16.mxu1 %v1437_v9 }
  0x53   :  { %1293 = vmatpush3.bf16.msra.mxu0 %v1418_v17 }
  0x54   :  { %1294 = vmatprep.subr.bf16.mxu0 %v1437_v9 }
  0x55   :  { %1313 = vmatpush3.bf16.msra.mxu1 %v1427_v26 }
  0x56   :  { %1314 = vmatprep.subr.bf16.mxu1 %v1437_v9 }
  0x57   :  { %1295 = vmatpush3.bf16.msra.mxu0 %v1419_v18 }
  0x58   :  { %1296 = vmatprep.subr.bf16.mxu0 %v1437_v9 }
  0x59   :  { %1315 = vmatpush3.bf16.msra.mxu1 %v1428_v27 }
  0x5a   :  { %1316 = vmatprep.subr.bf16.mxu1 %v1437_v9 }
  0x5b   :  { %1297 = vmatpush3.bf16.msra.mxu0 %v1420_v19 }
  0x5c   :  { %1298 = vmatprep.subr.bf16.mxu0 %v1437_v9 }
  0x5d   :  { %1317 = vmatpush3.bf16.msra.mxu1 %v1429_v28 }
  0x5e   :  { %1318 = vmatprep.subr.bf16.mxu1 %v1437_v9 }
  0x5f   :  { %1299 = vmatpush3.bf16.msra.mxu0 %v1421_v20 }
  0x60   :  { %1324 = vmatprep.subr.bf16.mxu0 %v1437_v9 }
  0x61   :  { %1319 = vmatpush3.bf16.msra.mxu1 %v922_v30 }
  0x62   :  { %1301 = vmatmul.mubr.bf16.vlgmr.msra.gmra.mrb[8].mxu0 %v1422_v21 }
  0x63   :  { %1336 = vmatprep.mubr.msk.bf16.mxu0 %vm1438_vm0, %v1437_v9  ;;  %1325 = vmatpush3.bf16.msra.mxu0 %v1431_v31 }
  0x64   :  { %1326 = vmatprep.subr.bf16.mxu0 %v1437_v9 }
  0x67   :  { %1327 = vmatpush3.bf16.msra.mxu0 %v1432_v32 }
  0x68   :  { %1328 = vmatprep.subr.bf16.mxu0 %v1437_v9 }
  0x6b   :  { %1329 = vmatpush3.bf16.msra.mxu0 %v1433_v33 }
  0x6c   :  { %1330 = vmatprep.subr.bf16.mxu0 %v1437_v9 }
  0x6f   :  { %1331 = vmatpush3.bf16.msra.mxu0 %v1434_v34 }
  0x70   :  { %1332 = vmatprep.subr.bf16.mxu0 %v1437_v9 }
  0x73   :  { %1333 = vmatpush3.bf16.msra.mxu0 %v1435_v3 }
  0x74   :  { %1334 = vmatprep.subr.bf16.mxu0 %v1437_v9  ;;  %v1163_v9 = vld [vmem:[%s1798_s6] ss:$0 sm:$0xff] }
  0x77   :  { %1335 = vmatpush3.bf16.msra.mxu0 %v1023_v5 }
  0xf5   :  { %v1187_v35 = vpop.f32.mrb[0].mxu0 }
  0xf6   :  { %v1188_v37 = vpop.f32.mrb[1].mxu0 }
  0xf7   :  { %v1189_v38 = vadd.f32 %v1188_v37, %v1187_v35  ;;  %v1190_v39 = vpop.f32.mrb[2].mxu0  ;;  %v1209_v40 = vpop.f32.mrb[0].mxu1 }
  0xf8   :  { %v1191_v41 = vpop.f32.mrb[3].mxu0  ;;  %v1210_v42 = vpop.f32.mrb[1].mxu1 }
  0xf9   :  { %v682_v43 = vadd.f32 %v1189_v38, %v1071_v36  ;;  %v1211_v44 = vadd.f32 %v1210_v42, %v1209_v40  ;;  %v1212_v45 = vpop.f32.mrb[2].mxu1 }
  0xfa   :  { %v1213_v46 = vpop.f32.mrb[3].mxu1 }
  0xfb   :  { %v722_v47 = vadd.f32 %v1211_v44, %v682_v43 }
 0x115   :  { %v1231_v48 = vpop.f32.mrb[4].mxu0 }
 0x116   :  { %v1232_v49 = vpop.f32.mrb[5].mxu0 }
 0x117   :  { %v1233_v50 = vadd.f32 %v1232_v49, %v1231_v48  ;;  %v1234_v51 = vpop.f32.mrb[6].mxu0  ;;  %v1253_v52 = vpop.f32.mrb[4].mxu1 }
 0x118   :  { %v1235_v53 = vpop.f32.mrb[7].mxu0  ;;  %v1254_v54 = vpop.f32.mrb[5].mxu1 }
 0x119   :  { %v762_v55 = vadd.f32 %v1233_v50, %v722_v47  ;;  %v1255_v56 = vadd.f32 %v1254_v54, %v1253_v52  ;;  %v1256_v57 = vpop.f32.mrb[6].mxu1 }
 0x11a   :  { %v1257_v58 = vpop.f32.mrb[7].mxu1 }
 0x11b   :  { %v802_v59 = vadd.f32 %v1255_v56, %v762_v55 }
 0x135   :  { %v841_v60 = vpop.f32.mrb[8].mxu0 }
 0x136   :  { %v842_v61 = vadd.f32 %v841_v60, %v802_v59  ;;  %v1302_v62 = vpop.f32.mrb[9].mxu0 }
 0x137   :  { %v844_v63 = vpop.f32.mrb[10].mxu0 }
 0x138   :  { %v847_v0 = vmax.f32 %v842_v61, 0.0  ;;  %v1303_v1 = vpop.f32.mrb[11].mxu0 }
 0x13a   :  { %v848_v2 = vpack.c.bf16 %v847_v0, %v847_v0 }
 0x13c   :  { %1321 = vmatmul.mubr.msk.bf16.vlgmr.msra.gmra.mrb[8].mxu1 %vm916_vm2, %v848_v2 }
 0x20f   :  { %v958_v7 = vpop.f32.mrb[8].mxu1 }
 0x210   :  { %v959_v8 = vadd.f32 %v1153_v6, %v958_v7  ;;  %v1322_v10 = vpop.f32.mrb[9].mxu1 }
 0x211   :  { %v961_v11 = vpop.f32.mrb[10].mxu1 }
 0x212   :  { %v964_v12 = vmax.f32 %v959_v8, 0.0  ;;  %v1323_v13 = vpop.f32.mrb[11].mxu1 }
 0x214   :  { %v965_v14 = vpack.c.bf16 %v964_v12, %v964_v12 }
 0x216   :  { %1337 = vmatmul.mubr.msk.bf16.vlgmr.msra.gmra.mrb[12].mxu0 %vm1017_vm4, %v965_v14 }
 0x2e9   :  { %v1059_v15 = vpop.f32.mrb[12].mxu0 }
 0x2ea   :  { %v1060_v16 = vadd.f32 %v1163_v9, %v1059_v15  ;;  %v1338_v17 = vpop.f32.mrb[13].mxu0 }
 0x2eb   :  { %v1062_v18 = vpop.f32.mrb[14].mxu0 }
 0x2ec   :  { %1066 = vst.msk [vmem:[%s1799_s7] sm:$0xff] %vm1065_vm5, %v1060_v16  ;;  %v1339_v19 = vpop.f32.mrb[15].mxu0 }

</bundles_post_ra>
